<compile_context>
chip_gen: v7x
topology: tpu7x:2x2x1
jax: 0.10.0
libtpu: 0.0.40
codegen_flags: <defaults>
</compile_context>

<pallas_src>
import jax
import jax.numpy as jnp
from jax.experimental import pallas as pl
from jax.experimental.pallas import tpu as pltpu

N_SIDES = 4
NORTH, EAST, SOUTH, WEST = 0, 1, 2, 3
LN_EPS = 1e-5          # torch.nn.LayerNorm default
ROW_TILE = 512         # tokens per grid step (~3 MiB VMEM/step incl. double buffers)


# ---------------------------------------------------------------------------
# Pallas kernels
# ---------------------------------------------------------------------------
def _layer_kernel(x_ref, n_ref,
                  w_ex_ref, b_ex_ref, g_ex_ref, be_ex_ref,
                  w_ip_ref, w_im_ref, b_in_ref, g_in_ref, be_in_ref,
                  w_mlp_ref, b_mlp_ref, g_mlp_ref, be_mlp_ref,
                  m_ln_ref, o_ref):
    """One full GNN layer on a lane-dense [TILE, S*E] token slab.

    exter(+res) -> inter shift=+1(+res) -> inter shift=-1(+res) -> MLP(+res).
    Per-side weights are packed block-diagonally; the inter side-roll is folded into the
    packed 'other' weight; per-side LayerNorm stats use a group-mean matmul (m_ln).
    """
    f32 = jnp.float32
    mxu_dtype = x_ref.dtype
    m_ln = m_ln_ref[...]                                        # (S*E, S*E) f32

    def block(h, gamma, beta, x_res):
        # ReLU -> per-side LayerNorm (one-pass variance) -> affine -> residual, all f32.
        h = jnp.maximum(h, 0.0)
        mu = jnp.dot(h, m_ln, preferred_element_type=f32)       # per-side mean, broadcast
        ex2 = jnp.dot(h * h, m_ln, preferred_element_type=f32)  # per-side E[h^2]
        inv = jax.lax.rsqrt(ex2 - mu * mu + LN_EPS)
        return x_res + (h - mu) * (inv * gamma) + beta

    x_in = x_ref[...]                                           # bf16 MXU operand
    x = x_in.astype(f32)                                        # f32 residual stream

    # exter: merged dual matmul  concat([x, neigh]) @ [Ws_bd; Wo_bd]  (TILE,2SE)@(2SE,SE)
    xn = jnp.concatenate([x_in, n_ref[...]], axis=-1)
    h = jnp.dot(xn, w_ex_ref[...], preferred_element_type=f32) + b_ex_ref[...]
    x = block(h, g_ex_ref[...], be_ex_ref[...], x)

    # inter, shift=+1 (self + side-rolled other folded into one packed weight)
    h = jnp.dot(x.astype(mxu_dtype), w_ip_ref[...], preferred_element_type=f32) + b_in_ref[...]
    x = block(h, g_in_ref[...], be_in_ref[...], x)

    # inter, shift=-1
    h = jnp.dot(x.astype(mxu_dtype), w_im_ref[...], preferred_element_type=f32) + b_in_ref[...]
    x = block(h, g_in_ref[...], be_in_ref[...], x)

    # MLP
    h = jnp.dot(x.astype(mxu_dtype), w_mlp_ref[...], preferred_element_type=f32) + b_mlp_ref[...]
    x = block(h, g_mlp_ref[...], be_mlp_ref[...], x)

    o_ref[...] = x.astype(o_ref.dtype)


def _reduce_sides_kernel(x_ref, o_ref):
    """Mean over the N_SIDES lane groups: [TILE, S*E] -> [TILE, E] (f32)."""
    x = x_ref[...].astype(jnp.float32)
    e = o_ref.shape[-1]
    acc = x[:, 0:e]
    for s in range(1, N_SIDES):
        acc = acc + x[:, s * e:(s + 1) * e]
    o_ref[...] = acc * (1.0 / N_SIDES)


# ---------------------------------------------------------------------------
# pallas_call wrappers
# ---------------------------------------------------------------------------
def _row_tile(n, target=ROW_TILE):
    """Largest clean row tile <= target (full extent if the array already fits)."""
    if n <= target:
        return n                          # block == full dim, always legal
    for t in (target, 256, 128, 64, 32, 16, 8):
        if n % t == 0:
            return t
    return target                         # ragged last tile handled by Pallas masking


def _layer_call(x, neigh, lp, m_ln):
    n, se = x.shape
    tile = _row_tile(n)
    row = lambda i: (i, 0)
    full = lambda i: (0, 0)
    vec = pl.BlockSpec((1, se), full)
    return pl.pallas_call(
        _layer_kernel,
        out_shape=jax.ShapeDtypeStruct((n, se), x.dtype),
        grid_spec=pltpu.PrefetchScalarGridSpec(
            num_scalar_prefetch=0,
            grid=(pl.cdiv(n, tile),),
            in_specs=[
                pl.BlockSpec((tile, se), row),        # x
                pl.BlockSpec((tile, se), row),        # neigh
                pl.BlockSpec((2 * se, se), full),     # w_ex  = [Ws_bd ; Wo_bd]
                vec, vec, vec,                        # b_ex, gamma_ex, beta_ex
                pl.BlockSpec((se, se), full),         # w_inter, shift=+1
                pl.BlockSpec((se, se), full),         # w_inter, shift=-1
                vec, vec, vec,                        # b_in, gamma_in, beta_in
                pl.BlockSpec((se, se), full),         # w_mlp (block-diag)
                vec, vec, vec,                        # b_mlp, gamma_mlp, beta_mlp
                pl.BlockSpec((se, se), full),         # m_ln group-mean matrix
            ],
            out_specs=pl.BlockSpec((tile, se), row),
        ),
        compiler_params=pltpu.CompilerParams(dimension_semantics=("parallel",)),
    )(x, neigh,
      lp["w_ex"], lp["b_ex"], lp["g_ex"], lp["beta_ex"],
      lp["w_in_p1"], lp["w_in_m1"], lp["b_in"], lp["g_in"], lp["beta_in"],
      lp["w_mlp"], lp["b_mlp"], lp["g_mlp"], lp["beta_mlp"], m_ln)


def _reduce_sides(x, e):
    n, se = x.shape
    tile = _row_tile(n)
    return pl.pallas_call(
        _reduce_sides_kernel,
        out_shape=jax.ShapeDtypeStruct((n, e), jnp.float32),
        grid_spec=pltpu.PrefetchScalarGridSpec(
            num_scalar_prefetch=0,
            grid=(pl.cdiv(n, tile),),
            in_specs=[pl.BlockSpec((tile, se), lambda i: (i, 0))],
            out_specs=pl.BlockSpec((tile, e), lambda i: (i, 0)),
        ),
        compiler_params=pltpu.CompilerParams(dimension_semantics=("parallel",)),
    )(x)


# ---------------------------------------------------------------------------
# JAX glue: neighbour gather (pure data movement), params, forward
# ---------------------------------------------------------------------------
def _exter_neighbours(tokens):
    """neigh[b,h,w,s] = embedding of the facing side of the adjacent token (zero off-board).

    Matches the torch zero-padding applied before other_linear; other_linear's bias is
    added inside the kernel, so other_linear(0) == bias is reproduced exactly.
    """
    # TODO(synk): could be moved fully in-kernel with halo BlockSpecs over (h, w) tiles to
    # drop this extra HBM round trip per layer; kept in JAX as a single pad + 4 slices.
    B, H, W, S, E = tokens.shape
    p = jnp.pad(tokens, ((0, 0), (1, 1), (1, 1), (0, 0), (0, 0)))
    sides = [None] * S
    sides[NORTH] = p[:, 0:H,     1:W + 1, SOUTH]   # SOUTH side of the token above
    sides[SOUTH] = p[:, 2:H + 2, 1:W + 1, NORTH]   # NORTH side of the token below
    sides[EAST]  = p[:, 1:H + 1, 2:W + 2, WEST]    # WEST  side of the token to the right
    sides[WEST]  = p[:, 1:H + 1, 0:W,     EAST]    # EAST  side of the token to the left
    return jnp.stack(sides, axis=3)


def init_params(key, embedding_dim, n_layers, n_classes):
    """Raw parameters mirroring the torch module's per-layer linears / LayerNorms."""
    E = embedding_dim
    # TODO(synk): ClassEncoding's source was not provided; using a deterministic
    # sinusoidal class-id encoding table of shape [n_classes, E] as a stand-in.
    pos = jnp.arange(n_classes, dtype=jnp.float32)[:, None]
    idx = jnp.arange(E)[None, :]
    angle = pos / jnp.power(10000.0, (2.0 * (idx // 2)) / E)
    class_enc = jnp.where(idx % 2 == 0, jnp.sin(angle), jnp.cos(angle)).astype(jnp.float32)

    def linear(k):
        kw, kb = jax.random.split(k)
        w = jax.random.normal(kw, (E, E), jnp.float32) / jnp.sqrt(E)
        b = jax.random.normal(kb, (E,), jnp.float32) * 0.01
        return w, b

    ones = jnp.ones((E,), jnp.float32)
    zeros = jnp.zeros((E,), jnp.float32)
    layers = []
    for _ in range(n_layers):
        key, *ks = jax.random.split(key, 6)
        ews, ebs = linear(ks[0])
        ewo, ebo = linear(ks[1])
        iws, ibs = linear(ks[2])
        iwo, ibo = linear(ks[3])
        mw, mb = linear(ks[4])
        layers.append(dict(
            exter=(ews, ebs, ewo, ebo, ones, zeros),   # LayerNorm default gamma=1, beta=0
            inter=(iws, ibs, iwo, ibo, ones, zeros),
            mlp=(mw, mb, ones, zeros),
        ))
    return dict(class_enc=class_enc, layers=layers)


def pack_params(params):
    """Pack weights into the lane-dense kernel layout (done once, outside the forward).

    * per-side (E,E) linears  -> block-diagonal (S*E,S*E) bf16 MXU weights
    * inter torch.roll(sides) -> 'other' weight placed on the shifted block diagonal and
      summed with the 'self' weight (one matmul per inter pass, no in-kernel roll)
    * exter self/other        -> stacked along K into one (2*S*E,S*E) weight
    * biases / LN affine      -> tiled (1, S*E) f32 rows
    * m_ln                    -> (S*E,S*E) group-mean matrix for per-side LayerNorm stats
    """
    E = params["class_enc"].shape[-1]
    S = N_SIDES
    SE = S * E

    def bdiag(w):
        out = jnp.zeros((SE, SE), w.dtype)
        for s in range(S):
            out = out.at[s * E:(s + 1) * E, s * E:(s + 1) * E].set(w)
        return out

    def bshift(w, shift):
        # output side d = (s + shift) % S receives input side s through w.
        out = jnp.zeros((SE, SE), w.dtype)
        for s in range(S):
            d = (s + shift) % S
            out = out.at[s * E:(s + 1) * E, d * E:(d + 1) * E].set(w)
        return out

    def row(v):
        return jnp.tile(v, S).reshape(1, SE).astype(jnp.float32)

    layers = []
    for lp in params["layers"]:
        ews, ebs, ewo, ebo, eg, ebeta = lp["exter"]
        iws, ibs, iwo, ibo, ig, ibeta = lp["inter"]
        mw, mb, mg, mbeta = lp["mlp"]
        layers.append(dict(
            w_ex=jnp.concatenate([bdiag(ews), bdiag(ewo)], axis=0).astype(jnp.bfloat16),
            b_ex=row(ebs + ebo), g_ex=row(eg), beta_ex=row(ebeta),
            w_in_p1=(bdiag(iws) + bshift(iwo, +1)).astype(jnp.bfloat16),
            w_in_m1=(bdiag(iws) + bshift(iwo, -1)).astype(jnp.bfloat16),
            b_in=row(ibs + ibo), g_in=row(ig), beta_in=row(ibeta),
            w_mlp=bdiag(mw).astype(jnp.bfloat16),
            b_mlp=row(mb), g_mlp=row(mg), beta_mlp=row(mbeta),
        ))
    groups = jnp.arange(SE) // E
    m_ln = (groups[:, None] == groups[None, :]).astype(jnp.float32) / float(E)
    return dict(class_enc=params["class_enc"], layers=layers, m_ln=m_ln)


@jax.jit
def gnn_backbone_forward(boards, packed):
    """boards: [B, N_SIDES, H, W] int class ids (matches the 'b t h w e -> b h w t e'
    Rearrange of embed_tokens). Returns [H*W, B, E] float32."""
    tokens = packed["class_enc"][boards]                    # [B, S, H, W, E] f32
    tokens = jnp.transpose(tokens, (0, 2, 3, 1, 4))         # [B, H, W, S, E]
    tokens = tokens.astype(jnp.bfloat16)                    # bf16 HBM residual stream
    B, H, W, S, E = tokens.shape
    N, SE = B * H * W, S * E
    x = tokens.reshape(N, SE)                               # lane-dense [N, S*E] slab

    for layer in packed["layers"]:
        neigh = _exter_neighbours(x.reshape(B, H, W, S, E)).reshape(N, SE)
        x = _layer_call(x, neigh, layer, packed["m_ln"])    # one fused kernel per layer

    m = _reduce_sides(x, E)                                 # [N, E] f32 mean over sides
    # Reduce 'b h w t e -> (h w) b e'
    return jnp.transpose(m.reshape(B, H * W, E), (1, 0, 2))


if __name__ == "__main__":
    B, H, W, E, L = 2, 4, 4, 32, 2
    N_CLASSES = 13
    key = jax.random.PRNGKey(0)
    kb, kp = jax.random.split(key)
    boards = jax.random.randint(kb, (B, N_SIDES, H, W), 0, N_CLASSES, dtype=jnp.int32)
    params = init_params(kp, E, L, N_CLASSES)
    packed = pack_params(params)

    out = gnn_backbone_forward(boards, packed)
    out = jax.block_until_ready(out)
    assert out.shape == (H * W, B, E), out.shape
    assert bool(jnp.all(jnp.isfinite(out)))
    print("KERNEL_OK")
</pallas_src>

<mosaic_0001>
module attributes {stable_mosaic.version = 11 : i64} {
  func.func @_layer_kernel(%arg0: i32, %arg1: memref<32x128xbf16, #tpu.memory_space<vmem>>, %arg2: memref<32x128xbf16, #tpu.memory_space<vmem>>, %arg3: memref<256x128xbf16, #tpu.memory_space<vmem>>, %arg4: memref<1x128xf32, #tpu.memory_space<vmem>>, %arg5: memref<1x128xf32, #tpu.memory_space<vmem>>, %arg6: memref<1x128xf32, #tpu.memory_space<vmem>>, %arg7: memref<128x128xbf16, #tpu.memory_space<vmem>>, %arg8: memref<128x128xbf16, #tpu.memory_space<vmem>>, %arg9: memref<1x128xf32, #tpu.memory_space<vmem>>, %arg10: memref<1x128xf32, #tpu.memory_space<vmem>>, %arg11: memref<1x128xf32, #tpu.memory_space<vmem>>, %arg12: memref<128x128xbf16, #tpu.memory_space<vmem>>, %arg13: memref<1x128xf32, #tpu.memory_space<vmem>>, %arg14: memref<1x128xf32, #tpu.memory_space<vmem>>, %arg15: memref<1x128xf32, #tpu.memory_space<vmem>>, %arg16: memref<128x128xf32, #tpu.memory_space<vmem>>, %arg17: memref<32x128xbf16, #tpu.memory_space<vmem>>) attributes {dimension_semantics = [#tpu.dimension_semantics<parallel>], iteration_bounds = array<i64: 1>, scalar_prefetch = 0 : i64, scratch_operands = 0 : i64, tpu.core_type = #tpu.core_type<tc>, window_params = [{transform_indices = @transform_0, window_bounds = array<i64: 32, 128>}, {transform_indices = @transform_1, window_bounds = array<i64: 32, 128>}, {pipeline_mode = #tpu.pipeline_mode<synchronous>, transform_indices = @transform_2, window_bounds = array<i64: 256, 128>}, {pipeline_mode = #tpu.pipeline_mode<synchronous>, transform_indices = @transform_3, window_bounds = array<i64: 1, 128>}, {pipeline_mode = #tpu.pipeline_mode<synchronous>, transform_indices = @transform_4, window_bounds = array<i64: 1, 128>}, {pipeline_mode = #tpu.pipeline_mode<synchronous>, transform_indices = @transform_5, window_bounds = array<i64: 1, 128>}, {pipeline_mode = #tpu.pipeline_mode<synchronous>, transform_indices = @transform_6, window_bounds = array<i64: 128, 128>}, {pipeline_mode = #tpu.pipeline_mode<synchronous>, transform_indices = @transform_7, window_bounds = array<i64: 128, 128>}, {pipeline_mode = #tpu.pipeline_mode<synchronous>, transform_indices = @transform_8, window_bounds = array<i64: 1, 128>}, {pipeline_mode = #tpu.pipeline_mode<synchronous>, transform_indices = @transform_9, window_bounds = array<i64: 1, 128>}, {pipeline_mode = #tpu.pipeline_mode<synchronous>, transform_indices = @transform_10, window_bounds = array<i64: 1, 128>}, {pipeline_mode = #tpu.pipeline_mode<synchronous>, transform_indices = @transform_11, window_bounds = array<i64: 128, 128>}, {pipeline_mode = #tpu.pipeline_mode<synchronous>, transform_indices = @transform_12, window_bounds = array<i64: 1, 128>}, {pipeline_mode = #tpu.pipeline_mode<synchronous>, transform_indices = @transform_13, window_bounds = array<i64: 1, 128>}, {pipeline_mode = #tpu.pipeline_mode<synchronous>, transform_indices = @transform_14, window_bounds = array<i64: 1, 128>}, {pipeline_mode = #tpu.pipeline_mode<synchronous>, transform_indices = @transform_15, window_bounds = array<i64: 128, 128>}, {transform_indices = @transform_16, window_bounds = array<i64: 32, 128>}]} {
    %c0 = arith.constant 0 : index
    %c0_0 = arith.constant 0 : index
    %0 = vector.load %arg16[%c0, %c0_0] : memref<128x128xf32, #tpu.memory_space<vmem>>, vector<128x128xf32>
    %c0_1 = arith.constant 0 : index
    %c0_2 = arith.constant 0 : index
    %1 = vector.load %arg1[%c0_1, %c0_2] : memref<32x128xbf16, #tpu.memory_space<vmem>>, vector<32x128xbf16>
    %2 = arith.extf %1 : vector<32x128xbf16> to vector<32x128xf32>
    %c0_3 = arith.constant 0 : index
    %c0_4 = arith.constant 0 : index
    %3 = vector.load %arg2[%c0_3, %c0_4] : memref<32x128xbf16, #tpu.memory_space<vmem>>, vector<32x128xbf16>
    %4 = tpu.concatenate %1, %3 in 1 : vector<32x128xbf16>, vector<32x128xbf16> -> vector<32x256xbf16>
    %c0_5 = arith.constant 0 : index
    %c0_6 = arith.constant 0 : index
    %5 = vector.load %arg3[%c0_5, %c0_6] : memref<256x128xbf16, #tpu.memory_space<vmem>>, vector<256x128xbf16>
    %cst = arith.constant dense<0.000000e+00> : vector<32x128xf32>
    %6 = tpu.matmul %4, %5, %cst {dimension_numbers = #tpu.dot_dimension_numbers<[1], [0], [0], [1], [0, 0, 1, 1], [], []>} : vector<32x256xbf16>, vector<256x128xbf16>, vector<32x128xf32> -> vector<32x128xf32>
    %c0_7 = arith.constant 0 : index
    %c0_8 = arith.constant 0 : index
    %7 = vector.load %arg4[%c0_7, %c0_8] : memref<1x128xf32, #tpu.memory_space<vmem>>, vector<1x128xf32>
    %8 = vector.broadcast %7 : vector<1x128xf32> to vector<32x128xf32>
    %9 = arith.addf %6, %8 : vector<32x128xf32>
    %c0_9 = arith.constant 0 : index
    %c0_10 = arith.constant 0 : index
    %10 = vector.load %arg5[%c0_9, %c0_10] : memref<1x128xf32, #tpu.memory_space<vmem>>, vector<1x128xf32>
    %c0_11 = arith.constant 0 : index
    %c0_12 = arith.constant 0 : index
    %11 = vector.load %arg6[%c0_11, %c0_12] : memref<1x128xf32, #tpu.memory_space<vmem>>, vector<1x128xf32>
    %cst_13 = arith.constant 0.000000e+00 : f32
    %12 = vector.broadcast %cst_13 : f32 to vector<32x128xf32>
    %13 = arith.maximumf %9, %12 : vector<32x128xf32>
    %cst_14 = arith.constant dense<0.000000e+00> : vector<32x128xf32>
    %14 = tpu.matmul %13, %0, %cst_14 {dimension_numbers = #tpu.dot_dimension_numbers<[1], [0], [0], [1], [0, 0, 1, 1], [], []>} : vector<32x128xf32>, vector<128x128xf32>, vector<32x128xf32> -> vector<32x128xf32>
    %15 = arith.mulf %13, %13 : vector<32x128xf32>
    %cst_15 = arith.constant dense<0.000000e+00> : vector<32x128xf32>
    %16 = tpu.matmul %15, %0, %cst_15 {dimension_numbers = #tpu.dot_dimension_numbers<[1], [0], [0], [1], [0, 0, 1, 1], [], []>} : vector<32x128xf32>, vector<128x128xf32>, vector<32x128xf32> -> vector<32x128xf32>
    %17 = arith.mulf %14, %14 : vector<32x128xf32>
    %18 = arith.subf %16, %17 : vector<32x128xf32>
    %cst_16 = arith.constant 9.99999974E-6 : f32
    %19 = vector.broadcast %cst_16 : f32 to vector<32x128xf32>
    %20 = arith.addf %18, %19 : vector<32x128xf32>
    %21 = math.rsqrt %20 : vector<32x128xf32>
    %22 = arith.subf %13, %14 : vector<32x128xf32>
    %23 = vector.broadcast %10 : vector<1x128xf32> to vector<32x128xf32>
    %24 = arith.mulf %21, %23 : vector<32x128xf32>
    %25 = arith.mulf %22, %24 : vector<32x128xf32>
    %26 = arith.addf %2, %25 : vector<32x128xf32>
    %27 = vector.broadcast %11 : vector<1x128xf32> to vector<32x128xf32>
    %28 = arith.addf %26, %27 : vector<32x128xf32>
    %29 = arith.truncf %28 : vector<32x128xf32> to vector<32x128xbf16>
    %c0_17 = arith.constant 0 : index
    %c0_18 = arith.constant 0 : index
    %30 = vector.load %arg7[%c0_17, %c0_18] : memref<128x128xbf16, #tpu.memory_space<vmem>>, vector<128x128xbf16>
    %cst_19 = arith.constant dense<0.000000e+00> : vector<32x128xf32>
    %31 = tpu.matmul %29, %30, %cst_19 {dimension_numbers = #tpu.dot_dimension_numbers<[1], [0], [0], [1], [0, 0, 1, 1], [], []>} : vector<32x128xbf16>, vector<128x128xbf16>, vector<32x128xf32> -> vector<32x128xf32>
    %c0_20 = arith.constant 0 : index
    %c0_21 = arith.constant 0 : index
    %32 = vector.load %arg9[%c0_20, %c0_21] : memref<1x128xf32, #tpu.memory_space<vmem>>, vector<1x128xf32>
    %33 = vector.broadcast %32 : vector<1x128xf32> to vector<32x128xf32>
    %34 = arith.addf %31, %33 : vector<32x128xf32>
    %c0_22 = arith.constant 0 : index
    %c0_23 = arith.constant 0 : index
    %35 = vector.load %arg10[%c0_22, %c0_23] : memref<1x128xf32, #tpu.memory_space<vmem>>, vector<1x128xf32>
    %c0_24 = arith.constant 0 : index
    %c0_25 = arith.constant 0 : index
    %36 = vector.load %arg11[%c0_24, %c0_25] : memref<1x128xf32, #tpu.memory_space<vmem>>, vector<1x128xf32>
    %cst_26 = arith.constant 0.000000e+00 : f32
    %37 = vector.broadcast %cst_26 : f32 to vector<32x128xf32>
    %38 = arith.maximumf %34, %37 : vector<32x128xf32>
    %cst_27 = arith.constant dense<0.000000e+00> : vector<32x128xf32>
    %39 = tpu.matmul %38, %0, %cst_27 {dimension_numbers = #tpu.dot_dimension_numbers<[1], [0], [0], [1], [0, 0, 1, 1], [], []>} : vector<32x128xf32>, vector<128x128xf32>, vector<32x128xf32> -> vector<32x128xf32>
    %40 = arith.mulf %38, %38 : vector<32x128xf32>
    %cst_28 = arith.constant dense<0.000000e+00> : vector<32x128xf32>
    %41 = tpu.matmul %40, %0, %cst_28 {dimension_numbers = #tpu.dot_dimension_numbers<[1], [0], [0], [1], [0, 0, 1, 1], [], []>} : vector<32x128xf32>, vector<128x128xf32>, vector<32x128xf32> -> vector<32x128xf32>
    %42 = arith.mulf %39, %39 : vector<32x128xf32>
    %43 = arith.subf %41, %42 : vector<32x128xf32>
    %cst_29 = arith.constant 9.99999974E-6 : f32
    %44 = vector.broadcast %cst_29 : f32 to vector<32x128xf32>
    %45 = arith.addf %43, %44 : vector<32x128xf32>
    %46 = math.rsqrt %45 : vector<32x128xf32>
    %47 = arith.subf %38, %39 : vector<32x128xf32>
    %48 = vector.broadcast %35 : vector<1x128xf32> to vector<32x128xf32>
    %49 = arith.mulf %46, %48 : vector<32x128xf32>
    %50 = arith.mulf %47, %49 : vector<32x128xf32>
    %51 = arith.addf %28, %50 : vector<32x128xf32>
    %52 = vector.broadcast %36 : vector<1x128xf32> to vector<32x128xf32>
    %53 = arith.addf %51, %52 : vector<32x128xf32>
    %54 = arith.truncf %53 : vector<32x128xf32> to vector<32x128xbf16>
    %c0_30 = arith.constant 0 : index
    %c0_31 = arith.constant 0 : index
    %55 = vector.load %arg8[%c0_30, %c0_31] : memref<128x128xbf16, #tpu.memory_space<vmem>>, vector<128x128xbf16>
    %cst_32 = arith.constant dense<0.000000e+00> : vector<32x128xf32>
    %56 = tpu.matmul %54, %55, %cst_32 {dimension_numbers = #tpu.dot_dimension_numbers<[1], [0], [0], [1], [0, 0, 1, 1], [], []>} : vector<32x128xbf16>, vector<128x128xbf16>, vector<32x128xf32> -> vector<32x128xf32>
    %c0_33 = arith.constant 0 : index
    %c0_34 = arith.constant 0 : index
    %57 = vector.load %arg9[%c0_33, %c0_34] : memref<1x128xf32, #tpu.memory_space<vmem>>, vector<1x128xf32>
    %58 = vector.broadcast %57 : vector<1x128xf32> to vector<32x128xf32>
    %59 = arith.addf %56, %58 : vector<32x128xf32>
    %c0_35 = arith.constant 0 : index
    %c0_36 = arith.constant 0 : index
    %60 = vector.load %arg10[%c0_35, %c0_36] : memref<1x128xf32, #tpu.memory_space<vmem>>, vector<1x128xf32>
    %c0_37 = arith.constant 0 : index
    %c0_38 = arith.constant 0 : index
    %61 = vector.load %arg11[%c0_37, %c0_38] : memref<1x128xf32, #tpu.memory_space<vmem>>, vector<1x128xf32>
    %cst_39 = arith.constant 0.000000e+00 : f32
    %62 = vector.broadcast %cst_39 : f32 to vector<32x128xf32>
    %63 = arith.maximumf %59, %62 : vector<32x128xf32>
    %cst_40 = arith.constant dense<0.000000e+00> : vector<32x128xf32>
    %64 = tpu.matmul %63, %0, %cst_40 {dimension_numbers = #tpu.dot_dimension_numbers<[1], [0], [0], [1], [0, 0, 1, 1], [], []>} : vector<32x128xf32>, vector<128x128xf32>, vector<32x128xf32> -> vector<32x128xf32>
    %65 = arith.mulf %63, %63 : vector<32x128xf32>
    %cst_41 = arith.constant dense<0.000000e+00> : vector<32x128xf32>
    %66 = tpu.matmul %65, %0, %cst_41 {dimension_numbers = #tpu.dot_dimension_numbers<[1], [0], [0], [1], [0, 0, 1, 1], [], []>} : vector<32x128xf32>, vector<128x128xf32>, vector<32x128xf32> -> vector<32x128xf32>
    %67 = arith.mulf %64, %64 : vector<32x128xf32>
    %68 = arith.subf %66, %67 : vector<32x128xf32>
    %cst_42 = arith.constant 9.99999974E-6 : f32
    %69 = vector.broadcast %cst_42 : f32 to vector<32x128xf32>
    %70 = arith.addf %68, %69 : vector<32x128xf32>
    %71 = math.rsqrt %70 : vector<32x128xf32>
    %72 = arith.subf %63, %64 : vector<32x128xf32>
    %73 = vector.broadcast %60 : vector<1x128xf32> to vector<32x128xf32>
    %74 = arith.mulf %71, %73 : vector<32x128xf32>
    %75 = arith.mulf %72, %74 : vector<32x128xf32>
    %76 = arith.addf %53, %75 : vector<32x128xf32>
    %77 = vector.broadcast %61 : vector<1x128xf32> to vector<32x128xf32>
    %78 = arith.addf %76, %77 : vector<32x128xf32>
    %79 = arith.truncf %78 : vector<32x128xf32> to vector<32x128xbf16>
    %c0_43 = arith.constant 0 : index
    %c0_44 = arith.constant 0 : index
    %80 = vector.load %arg12[%c0_43, %c0_44] : memref<128x128xbf16, #tpu.memory_space<vmem>>, vector<128x128xbf16>
    %cst_45 = arith.constant dense<0.000000e+00> : vector<32x128xf32>
    %81 = tpu.matmul %79, %80, %cst_45 {dimension_numbers = #tpu.dot_dimension_numbers<[1], [0], [0], [1], [0, 0, 1, 1], [], []>} : vector<32x128xbf16>, vector<128x128xbf16>, vector<32x128xf32> -> vector<32x128xf32>
    %c0_46 = arith.constant 0 : index
    %c0_47 = arith.constant 0 : index
    %82 = vector.load %arg13[%c0_46, %c0_47] : memref<1x128xf32, #tpu.memory_space<vmem>>, vector<1x128xf32>
    %83 = vector.broadcast %82 : vector<1x128xf32> to vector<32x128xf32>
    %84 = arith.addf %81, %83 : vector<32x128xf32>
    %c0_48 = arith.constant 0 : index
    %c0_49 = arith.constant 0 : index
    %85 = vector.load %arg14[%c0_48, %c0_49] : memref<1x128xf32, #tpu.memory_space<vmem>>, vector<1x128xf32>
    %c0_50 = arith.constant 0 : index
    %c0_51 = arith.constant 0 : index
    %86 = vector.load %arg15[%c0_50, %c0_51] : memref<1x128xf32, #tpu.memory_space<vmem>>, vector<1x128xf32>
    %cst_52 = arith.constant 0.000000e+00 : f32
    %87 = vector.broadcast %cst_52 : f32 to vector<32x128xf32>
    %88 = arith.maximumf %84, %87 : vector<32x128xf32>
    %cst_53 = arith.constant dense<0.000000e+00> : vector<32x128xf32>
    %89 = tpu.matmul %88, %0, %cst_53 {dimension_numbers = #tpu.dot_dimension_numbers<[1], [0], [0], [1], [0, 0, 1, 1], [], []>} : vector<32x128xf32>, vector<128x128xf32>, vector<32x128xf32> -> vector<32x128xf32>
    %90 = arith.mulf %88, %88 : vector<32x128xf32>
    %cst_54 = arith.constant dense<0.000000e+00> : vector<32x128xf32>
    %91 = tpu.matmul %90, %0, %cst_54 {dimension_numbers = #tpu.dot_dimension_numbers<[1], [0], [0], [1], [0, 0, 1, 1], [], []>} : vector<32x128xf32>, vector<128x128xf32>, vector<32x128xf32> -> vector<32x128xf32>
    %92 = arith.mulf %89, %89 : vector<32x128xf32>
    %93 = arith.subf %91, %92 : vector<32x128xf32>
    %cst_55 = arith.constant 9.99999974E-6 : f32
    %94 = vector.broadcast %cst_55 : f32 to vector<32x128xf32>
    %95 = arith.addf %93, %94 : vector<32x128xf32>
    %96 = math.rsqrt %95 : vector<32x128xf32>
    %97 = arith.subf %88, %89 : vector<32x128xf32>
    %98 = vector.broadcast %85 : vector<1x128xf32> to vector<32x128xf32>
    %99 = arith.mulf %96, %98 : vector<32x128xf32>
    %100 = arith.mulf %97, %99 : vector<32x128xf32>
    %101 = arith.addf %78, %100 : vector<32x128xf32>
    %102 = vector.broadcast %86 : vector<1x128xf32> to vector<32x128xf32>
    %103 = arith.addf %101, %102 : vector<32x128xf32>
    %104 = arith.truncf %103 : vector<32x128xf32> to vector<32x128xbf16>
    %c0_56 = arith.constant 0 : index
    %c0_57 = arith.constant 0 : index
    %105 = vector.load %arg17[%c0_56, %c0_57] : memref<32x128xbf16, #tpu.memory_space<vmem>>, vector<32x128xbf16>
    tpu.vector_store %arg17[%c0_56, %c0_57], %104 {strides = array<i32>} : memref<32x128xbf16, #tpu.memory_space<vmem>>, vector<32x128xbf16>,
    return
  }
  func.func @transform_0(%arg0: i32) -> (i32, i32) {
    %c0_i32 = arith.constant 0 : i32
    %c0_i32_0 = arith.constant 0 : i32
    return %arg0, %c0_i32 : i32, i32
  }
  func.func @transform_1(%arg0: i32) -> (i32, i32) {
    %c0_i32 = arith.constant 0 : i32
    %c0_i32_0 = arith.constant 0 : i32
    return %arg0, %c0_i32 : i32, i32
  }
  func.func @transform_2(%arg0: i32) -> (i32, i32) {
    %c0_i32 = arith.constant 0 : i32
    %c0_i32_0 = arith.constant 0 : i32
    %c0_i32_1 = arith.constant 0 : i32
    return %c0_i32, %c0_i32_0 : i32, i32
  }
  func.func @transform_3(%arg0: i32) -> (i32, i32) {
    %c0_i32 = arith.constant 0 : i32
    %c0_i32_0 = arith.constant 0 : i32
    %c0_i32_1 = arith.constant 0 : i32
    return %c0_i32, %c0_i32_0 : i32, i32
  }
  func.func @transform_4(%arg0: i32) -> (i32, i32) {
    %c0_i32 = arith.constant 0 : i32
    %c0_i32_0 = arith.constant 0 : i32
    %c0_i32_1 = arith.constant 0 : i32
    return %c0_i32, %c0_i32_0 : i32, i32
  }
  func.func @transform_5(%arg0: i32) -> (i32, i32) {
    %c0_i32 = arith.constant 0 : i32
    %c0_i32_0 = arith.constant 0 : i32
    %c0_i32_1 = arith.constant 0 : i32
    return %c0_i32, %c0_i32_0 : i32, i32
  }
  func.func @transform_6(%arg0: i32) -> (i32, i32) {
    %c0_i32 = arith.constant 0 : i32
    %c0_i32_0 = arith.constant 0 : i32
    %c0_i32_1 = arith.constant 0 : i32
    return %c0_i32, %c0_i32_0 : i32, i32
  }
  func.func @transform_7(%arg0: i32) -> (i32, i32) {
    %c0_i32 = arith.constant 0 : i32
    %c0_i32_0 = arith.constant 0 : i32
    %c0_i32_1 = arith.constant 0 : i32
    return %c0_i32, %c0_i32_0 : i32, i32
  }
  func.func @transform_8(%arg0: i32) -> (i32, i32) {
    %c0_i32 = arith.constant 0 : i32
    %c0_i32_0 = arith.constant 0 : i32
    %c0_i32_1 = arith.constant 0 : i32
    return %c0_i32, %c0_i32_0 : i32, i32
  }
  func.func @transform_9(%arg0: i32) -> (i32, i32) {
    %c0_i32 = arith.constant 0 : i32
    %c0_i32_0 = arith.constant 0 : i32
    %c0_i32_1 = arith.constant 0 : i32
    return %c0_i32, %c0_i32_0 : i32, i32
  }
  func.func @transform_10(%arg0: i32) -> (i32, i32) {
    %c0_i32 = arith.constant 0 : i32
    %c0_i32_0 = arith.constant 0 : i32
    %c0_i32_1 = arith.constant 0 : i32
    return %c0_i32, %c0_i32_0 : i32, i32
  }
  func.func @transform_11(%arg0: i32) -> (i32, i32) {
    %c0_i32 = arith.constant 0 : i32
    %c0_i32_0 = arith.constant 0 : i32
    %c0_i32_1 = arith.constant 0 : i32
    return %c0_i32, %c0_i32_0 : i32, i32
  }
  func.func @transform_12(%arg0: i32) -> (i32, i32) {
    %c0_i32 = arith.constant 0 : i32
    %c0_i32_0 = arith.constant 0 : i32
    %c0_i32_1 = arith.constant 0 : i32
    return %c0_i32, %c0_i32_0 : i32, i32
  }
  func.func @transform_13(%arg0: i32) -> (i32, i32) {
    %c0_i32 = arith.constant 0 : i32
    %c0_i32_0 = arith.constant 0 : i32
    %c0_i32_1 = arith.constant 0 : i32
    return %c0_i32, %c0_i32_0 : i32, i32
  }
  func.func @transform_14(%arg0: i32) -> (i32, i32) {
    %c0_i32 = arith.constant 0 : i32
    %c0_i32_0 = arith.constant 0 : i32
    %c0_i32_1 = arith.constant 0 : i32
    return %c0_i32, %c0_i32_0 : i32, i32
  }
  func.func @transform_15(%arg0: i32) -> (i32, i32) {
    %c0_i32 = arith.constant 0 : i32
    %c0_i32_0 = arith.constant 0 : i32
    %c0_i32_1 = arith.constant 0 : i32
    return %c0_i32, %c0_i32_0 : i32, i32
  }
  func.func @transform_16(%arg0: i32) -> (i32, i32) {
    %c0_i32 = arith.constant 0 : i32
    %c0_i32_0 = arith.constant 0 : i32
    return %arg0, %c0_i32 : i32, i32
  }
}

module attributes {stable_mosaic.version = 11 : i64} {
  func.func @_reduce_sides_kernel(%arg0: i32, %arg1: memref<32x128xbf16, #tpu.memory_space<vmem>>, %arg2: memref<32x32xf32, #tpu.memory_space<vmem>>) attributes {dimension_semantics = [#tpu.dimension_semantics<parallel>], iteration_bounds = array<i64: 1>, scalar_prefetch = 0 : i64, scratch_operands = 0 : i64, tpu.core_type = #tpu.core_type<tc>, window_params = [{transform_indices = @transform_0, window_bounds = array<i64: 32, 128>}, {transform_indices = @transform_1, window_bounds = array<i64: 32, 32>}]} {
    %c0 = arith.constant 0 : index
    %c0_0 = arith.constant 0 : index
    %0 = vector.load %arg1[%c0, %c0_0] : memref<32x128xbf16, #tpu.memory_space<vmem>>, vector<32x128xbf16>
    %1 = arith.extf %0 : vector<32x128xbf16> to vector<32x128xf32>
    %2 = vector.extract_strided_slice %1 {offsets = [0, 0], sizes = [32, 32], strides = [1, 1]} : vector<32x128xf32> to vector<32x32xf32>
    %3 = vector.extract_strided_slice %1 {offsets = [0, 32], sizes = [32, 32], strides = [1, 1]} : vector<32x128xf32> to vector<32x32xf32>
    %4 = arith.addf %2, %3 : vector<32x32xf32>
    %5 = vector.extract_strided_slice %1 {offsets = [0, 64], sizes = [32, 32], strides = [1, 1]} : vector<32x128xf32> to vector<32x32xf32>
    %6 = arith.addf %4, %5 : vector<32x32xf32>
    %7 = vector.extract_strided_slice %1 {offsets = [0, 96], sizes = [32, 32], strides = [1, 1]} : vector<32x128xf32> to vector<32x32xf32>
    %8 = arith.addf %6, %7 : vector<32x32xf32>
    %cst = arith.constant 2.500000e-01 : f32
    %9 = vector.broadcast %cst : f32 to vector<32x32xf32>
    %10 = arith.mulf %8, %9 : vector<32x32xf32>
    %c0_1 = arith.constant 0 : index
    %c0_2 = arith.constant 0 : index
    %11 = vector.load %arg2[%c0_1, %c0_2] : memref<32x32xf32, #tpu.memory_space<vmem>>, vector<32x32xf32>
    tpu.vector_store %arg2[%c0_1, %c0_2], %10 {strides = array<i32>} : memref<32x32xf32, #tpu.memory_space<vmem>>, vector<32x32xf32>,
    return
  }
  func.func @transform_0(%arg0: i32) -> (i32, i32) {
    %c0_i32 = arith.constant 0 : i32
    %c0_i32_0 = arith.constant 0 : i32
    return %arg0, %c0_i32 : i32, i32
  }
  func.func @transform_1(%arg0: i32) -> (i32, i32) {
    %c0_i32 = arith.constant 0 : i32
    %c0_i32_0 = arith.constant 0 : i32
    return %arg0, %c0_i32 : i32, i32
  }
}

</mosaic_0001>

<bundles_post_ra>
// kernel: gnn_backbone_forward.5
= control target key start
LH: loop header
LB: loop body
LE: loop exit
PB: predicated region body
PF: predicated region fallthrough
CT: control target
= control target key end

     0   :  { %s135_s10 = smov 64   ;;  %s136_s11 = smov 96   ;;  %vm72_vm0 = vcmask 261120   ;;  %s166_s0 = inlined_call_operand.vmem [shape: bf16[32,128], index: 0, kind: input, shape index: {}]   ;;  %s167_s1 = inlined_call_operand.vmem [shape: f32[32,32], index: 1, kind: output, shape index: {}]  }
   0x1   :  { %v82_v0 = vld [vmem:[%s166_s0] sm:$0xff]   ;;  %v89_v1 = vld [vmem:[%s166_s0 + $0x8] sm:$0xff]   ;;  %s137_s12 = smov 32  }
   0x2   :  { %v83_v2 = vunpack.c.l.bf16 %v82_v0  ;;  %v84_v3 = vunpack.c.h.bf16 %v82_v0  ;;  %v87_v4 = vunpack.c.l.bf16 %v89_v1  ;;  %v88_v5 = vunpack.c.h.bf16 %v89_v1 }
   0x4   :  { %v103_v6 = vpack.i.bf16 %v84_v3, %v83_v2  ;;  %v108_v7 = vpack.i.bf16 %v88_v5, %v87_v4 }
   0x6   :  { %104 = vrot.lane.b32.xlu1 %v103_v6, %s135_s10  ;;  %94 = vrot.lane.b32.xlu0 %v103_v6, %s136_s11 }
   0xa   :  { %109 = vrot.lane.b32.xlu1 %v108_v7, %s135_s10  ;;  %99 = vrot.lane.b32.xlu0 %v108_v7, %s136_s11 }
   0xe   :  { %119 = vrot.lane.b32.xlu1 %v108_v7, %s137_s12  ;;  %114 = vrot.lane.b32.xlu0 %v103_v6, %s137_s12 }
  0x78   :  { %v105_v8 = vpop.permute.xlu1 %104  ;;  %v95_v9 = vpop.permute.xlu0 %94 }
  0x79   :  { %v123_v12 = vadd.high.f32.bf16 %v84_v3, %v95_v9  ;;  %v124_v13 = vadd.low.f32.bf16 %v83_v2, %v95_v9 }
  0x7b   :  { %v129_v20 = vadd.low.f32.bf16 %v124_v13, %v105_v8  ;;  %v130_v21 = vadd.high.f32.bf16 %v123_v12, %v105_v8 }
  0x7c   :  { %v110_v10 = vpop.permute.xlu1 %109  ;;  %v100_v11 = vpop.permute.xlu0 %99 }
  0x7d   :  { %v125_v14 = vadd.high.f32.bf16 %v88_v5, %v100_v11  ;;  %v126_v15 = vadd.low.f32.bf16 %v87_v4, %v100_v11 }
  0x7f   :  { %v127_v18 = vadd.low.f32.bf16 %v126_v15, %v110_v10  ;;  %v128_v19 = vadd.high.f32.bf16 %v125_v14, %v110_v10 }
  0x80   :  { %v120_v16 = vpop.permute.xlu1 %119  ;;  %v115_v17 = vpop.permute.xlu0 %114 }
  0x81   :  { %v131_v22 = vadd.low.f32.bf16 %v127_v18, %v120_v16  ;;  %v132_v23 = vadd.high.f32.bf16 %v128_v19, %v120_v16  ;;  %v133_v24 = vadd.low.f32.bf16 %v129_v20, %v115_v17  ;;  %v134_v25 = vadd.high.f32.bf16 %v130_v21, %v115_v17 }
  0x83   :  { %v70_v26 = vmul.f32 0.25, %v131_v22  ;;  %v71_v27 = vmul.f32 0.25, %v132_v23  ;;  %v68_v28 = vmul.f32 0.25, %v133_v24  ;;  %v69_v29 = vmul.f32 0.25, %v134_v25 }
  0x85   :  { %75 = vst.msk [vmem:[%s167_s1 + $0x10] sm:$0xff] %vm72_vm0, %v70_v26  ;;  %76 = vst.msk [vmem:[%s167_s1 + $0x18] sm:$0xff] %vm72_vm0, %v71_v27 }
  0x86   :  { %73 = vst.msk [vmem:[%s167_s1] sm:$0xff] %vm72_vm0, %v68_v28  ;;  %74 = vst.msk [vmem:[%s167_s1 + $0x8] sm:$0xff] %vm72_vm0, %v69_v29 }

// kernel: gnn_backbone_forward.3
= control target key start
LH: loop header
LB: loop body
LE: loop exit
PB: predicated region body
PF: predicated region fallthrough
CT: control target
= control target key end

     0   :  { %s3167_s2 = inlined_call_operand.vmem [shape: bf16[256,128], index: 2, kind: input, shape index: {}]   ;;  %s3168_s1 = inlined_call_operand.vmem [shape: bf16[32,128], index: 1, kind: input, shape index: {}]   ;;  %s3169_s15 = inlined_call_operand.vmem [shape: f32[128,128], index: 15, kind: input, shape index: {}]   ;;  %s3170_s0 = inlined_call_operand.vmem [shape: bf16[32,128], index: 0, kind: input, shape index: {}]   ;;  %s3171_s3 = inlined_call_operand.vmem [shape: f32[1,128], index: 3, kind: input, shape index: {}]   ;;  %s3172_s6 = inlined_call_operand.vmem [shape: bf16[128,128], index: 6, kind: input, shape index: {}]   ;;  %s3173_s4 = inlined_call_operand.vmem [shape: f32[1,128], index: 4, kind: input, shape index: {}]   ;;  %s3174_s5 = inlined_call_operand.vmem [shape: f32[1,128], index: 5, kind: input, shape index: {}]   ;;  %s3175_s8 = inlined_call_operand.vmem [shape: f32[1,128], index: 8, kind: input, shape index: {}]   ;;  %s3176_s7 = inlined_call_operand.vmem [shape: bf16[128,128], index: 7, kind: input, shape index: {}]   ;;  %s3177_s9 = inlined_call_operand.vmem [shape: f32[1,128], index: 9, kind: input, shape index: {}]   ;;  %s3178_s10 = inlined_call_operand.vmem [shape: f32[1,128], index: 10, kind: input, shape index: {}]   ;;  %s3179_s11 = inlined_call_operand.vmem [shape: bf16[128,128], index: 11, kind: input, shape index: {}]   ;;  %s3180_s12 = inlined_call_operand.vmem [shape: f32[1,128], index: 12, kind: input, shape index: {}]   ;;  %s3181_s13 = inlined_call_operand.vmem [shape: f32[1,128], index: 13, kind: input, shape index: {}]   ;;  %s3182_s14 = inlined_call_operand.vmem [shape: f32[1,128], index: 14, kind: input, shape index: {}]   ;;  %s3183_s16 = inlined_call_operand.vmem [shape: bf16[32,128], index: 16, kind: output, shape index: {}]  }
   0x1   :  { %3185 = sst [smem:[#allocation2_spill]] %s3167_s2  ;;  %v2497_v11 = vld [vmem:[%s3168_s1] sm:$0xff]   ;;  %v55_v14 = vld [vmem:[%s3169_s15 + $0x8] sm:$0xff]  ;;  %v56_v15 = vld [vmem:[%s3169_s15 + $0x10] sm:$0xff] }
   0x2   :  { %s3186_s23 = sld [smem:[#allocation2_spill]]  ;;  %273 = vmatprep.mubr.bf16.mxu0 %v2497_v11  ;;  %v54_v13 = vld [vmem:[%s3169_s15] sm:$0xff]  ;;  %v57_v16 = vld [vmem:[%s3169_s15 + $0x18] sm:$0xff]  ;;  %v59_v21 = vld [vmem:[%s3169_s15 + $0x28] sm:$0xff] }
   0x3   :  { %v2698_v18 = vpack.c.bf16 %v55_v14, %v54_v13  ;;  %v2700_v19 = vpack.c.bf16 %v57_v16, %v56_v15  ;;  %v58_v20 = vld [vmem:[%s3169_s15 + $0x20] sm:$0xff]  ;;  %v60_v25 = vld [vmem:[%s3169_s15 + $0x30] sm:$0xff]  ;;  %v61_v26 = vld [vmem:[%s3169_s15 + $0x38] sm:$0xff] }
   0x4   :  { %v2717_v24 = vpack.c.bf16 %v59_v21, %v58_v20  ;;  %v2731_v28 = vld [vmem:[%s3170_s0] sm:$0xff]   ;;  %v2735_v29 = vpack.c.bf16 %v61_v26, %v60_v25  ;;  %v63_v31 = vld [vmem:[%s3169_s15 + $0x48] sm:$0xff]  ;;  %v64_v34 = vld [vmem:[%s3169_s15 + $0x50] sm:$0xff] }
   0x5   :  { %2226 = vmatprep.subr.bf16.mxu1 %v2698_v18  ;;  %v62_v30 = vld [vmem:[%s3169_s15 + $0x40] sm:$0xff]  ;;  %v2499_v32 = vld [vmem:[%s3168_s1 + $0x8] sm:$0xff]   ;;  %v65_v35 = vld [vmem:[%s3169_s15 + $0x58] sm:$0xff] }
   0x6   :  { %2228 = vmatpush3.bf16.msra.mxu1 %v2698_v18  ;;  %v2749_v33 = vpack.c.bf16 %v63_v31, %v62_v30  ;;  %v2761_v36 = vld [vmem:[%s3170_s0 + $0x8] sm:$0xff]   ;;  %v2767_v37 = vpack.c.bf16 %v65_v35, %v64_v34  ;;  %v66_v38 = vld [vmem:[%s3169_s15 + $0x60] sm:$0xff]  ;;  %v68_v41 = vld [vmem:[%s3169_s15 + $0x70] sm:$0xff] }
   0x7   :  { %2230 = vmatprep.subr.bf16.mxu1 %v2700_v19  ;;  %v67_v39 = vld [vmem:[%s3169_s15 + $0x68] sm:$0xff]  ;;  %v69_v42 = vld [vmem:[%s3169_s15 + $0x78] sm:$0xff]  ;;  %v1575_v45 = vld [vmem:[%s3171_s3] ss:$0 sm:$0xff] }
   0x8   :  { %v2481_v0 = vld [vmem:[%s3186_s23 + $0x40] sm:$0xff]   ;;  %v2483_v2 = vld [vmem:[%s3186_s23 + $0x48] sm:$0xff]   ;;  %v2485_v4 = vld [vmem:[%s3186_s23 + $0x50] sm:$0xff]   ;;  %v2788_v40 = vpack.c.bf16 %v67_v39, %v66_v38  ;;  %v2800_v43 = vpack.c.bf16 %v69_v42, %v68_v41 }
   0x9   :  { %v2482_v1 = vld [vmem:[%s3186_s23] sm:$0xff]   ;;  %1643 = vmatprep.subr.bf16.mxu0 %v2481_v0  ;;  %v2484_v3 = vld [vmem:[%s3186_s23 + $0x8] sm:$0xff]   ;;  %v2486_v5 = vld [vmem:[%s3186_s23 + $0x10] sm:$0xff]  }
   0xa   :  { %1644 = vmatpush3.bf16.msra.mxu0 %v2482_v1  ;;  %v2487_v6 = vld [vmem:[%s3186_s23 + $0x58] sm:$0xff]   ;;  %v2489_v8 = vld [vmem:[%s3186_s23 + $0x60] sm:$0xff]   ;;  %v2491_v10 = vld [vmem:[%s3186_s23 + $0x68] sm:$0xff]   ;;  %2232 = vmatpush3.bf16.msra.mxu1 %v2700_v19 }
   0xb   :  { %1645 = vmatprep.subr.bf16.mxu0 %v2483_v2  ;;  %v2488_v7 = vld [vmem:[%s3186_s23 + $0x18] sm:$0xff]   ;;  %v2490_v9 = vld [vmem:[%s3186_s23 + $0x20] sm:$0xff]   ;;  %v2492_v12 = vld [vmem:[%s3186_s23 + $0x28] sm:$0xff]   ;;  %2234 = vmatprep.subr.bf16.mxu1 %v2717_v24 }
   0xc   :  { %v2493_v17 = vld [vmem:[%s3186_s23 + $0x70] sm:$0xff]   ;;  %v2495_v23 = vld [vmem:[%s3186_s23 + $0x78] sm:$0xff]   ;;  %v1592_v42 = vld [vmem:[%s3173_s4] ss:$0 sm:$0xff] }
   0xd   :  { %v2494_v22 = vld [vmem:[%s3186_s23 + $0x30] sm:$0xff]   ;;  %v2496_v27 = vld [vmem:[%s3186_s23 + $0x38] sm:$0xff]  }
   0xe   :  { %1646 = vmatpush3.bf16.msra.mxu0 %v2484_v3  ;;  %2236 = vmatpush3.bf16.msra.mxu1 %v2717_v24  ;;  %v2507_v11 = vld [vmem:[%s3172_s6 + $0x30] sm:$0xff]  }
   0xf   :  { %1647 = vmatprep.subr.bf16.mxu0 %v2485_v4  ;;  %2238 = vmatprep.subr.bf16.mxu1 %v2735_v29 }
  0x12   :  { %1648 = vmatpush3.bf16.msra.mxu0 %v2486_v5  ;;  %2240 = vmatpush3.bf16.msra.mxu1 %v2735_v29  ;;  %v2501_v5 = vld [vmem:[%s3172_s6] sm:$0xff]  }
  0x13   :  { %1649 = vmatprep.subr.bf16.mxu0 %v2487_v6  ;;  %2242 = vmatprep.subr.bf16.mxu1 %v2749_v33  ;;  %v2502_v6 = vld [vmem:[%s3172_s6 + $0x8] sm:$0xff]  }
  0x16   :  { %1650 = vmatpush3.bf16.msra.mxu0 %v2488_v7  ;;  %2244 = vmatpush3.bf16.msra.mxu1 %v2749_v33  ;;  %v2503_v7 = vld [vmem:[%s3172_s6 + $0x10] sm:$0xff]  }
  0x17   :  { %1651 = vmatprep.subr.bf16.mxu0 %v2489_v8  ;;  %2246 = vmatprep.subr.bf16.mxu1 %v2767_v37  ;;  %v2504_v8 = vld [vmem:[%s3172_s6 + $0x18] sm:$0xff]  }
  0x1a   :  { %1652 = vmatpush3.bf16.msra.mxu0 %v2490_v9  ;;  %2248 = vmatpush3.bf16.msra.mxu1 %v2767_v37  ;;  %v2505_v9 = vld [vmem:[%s3172_s6 + $0x20] sm:$0xff]  }
  0x1b   :  { %1653 = vmatprep.subr.bf16.mxu0 %v2491_v10  ;;  %2250 = vmatprep.subr.bf16.mxu1 %v2788_v40  ;;  %v2506_v10 = vld [vmem:[%s3172_s6 + $0x28] sm:$0xff]  }
  0x1e   :  { %1654 = vmatpush3.bf16.msra.mxu0 %v2492_v12  ;;  %2252 = vmatpush3.bf16.msra.mxu1 %v2788_v40  ;;  %v2508_v12 = vld [vmem:[%s3172_s6 + $0x38] sm:$0xff]  }
  0x1f   :  { %1655 = vmatprep.subr.bf16.mxu0 %v2493_v17  ;;  %2254 = vmatprep.subr.bf16.mxu1 %v2800_v43 }
  0x22   :  { %1656 = vmatpush3.bf16.msra.mxu0 %v2494_v22  ;;  %2256 = vmatpush3.bf16.msra.mxu1 %v2800_v43 }
  0x23   :  { %1657 = vmatprep.subr.bf16.mxu0 %v2495_v23  ;;  %1937 = vmatprep.subr.bf16.mxu1 %v2501_v5 }
  0x26   :  { %1658 = vmatpush3.bf16.msra.mxu0 %v2496_v27 }
  0x27   :  { %2258 = vmatprep.subr.bf16.mxu0 %v2698_v18 }
  0x29   :  { %274 = vmatmul.mubr.bf16.vlgmr.msra.gmra.mrb[0].mxu0 %v2731_v28 }
  0x2a   :  { %281 = vmatprep.mubr.bf16.mxu0 %v2499_v32  ;;  %2260 = vmatpush3.bf16.msra.mxu0 %v2698_v18 }
  0x2b   :  { %2262 = vmatprep.subr.bf16.mxu0 %v2700_v19 }
  0x2e   :  { %2264 = vmatpush3.bf16.msra.mxu0 %v2700_v19 }
  0x2f   :  { %2266 = vmatprep.subr.bf16.mxu0 %v2717_v24 }
  0x31   :  { %282 = vmatmul.mubr.bf16.gmra.mrb[4].mxu0 %v2761_v36 }
  0x32   :  { %2268 = vmatpush3.bf16.msra.mxu0 %v2717_v24 }
  0x33   :  { %2270 = vmatprep.subr.bf16.mxu0 %v2735_v29 }
  0x36   :  { %2272 = vmatpush3.bf16.msra.mxu0 %v2735_v29 }
  0x37   :  { %2274 = vmatprep.subr.bf16.mxu0 %v2749_v33 }
  0x3a   :  { %2276 = vmatpush3.bf16.msra.mxu0 %v2749_v33 }
  0x3b   :  { %2278 = vmatprep.subr.bf16.mxu0 %v2767_v37 }
  0x3e   :  { %2280 = vmatpush3.bf16.msra.mxu0 %v2767_v37 }
  0x3f   :  { %2282 = vmatprep.subr.bf16.mxu0 %v2788_v40 }
  0x42   :  { %2284 = vmatpush3.bf16.msra.mxu0 %v2788_v40 }
  0x43   :  { %2286 = vmatprep.subr.bf16.mxu0 %v2800_v43 }
  0x46   :  { %2288 = vmatpush3.bf16.msra.mxu0 %v2800_v43 }
  0x47   :  { %2290 = vmatprep.subr.bf16.mxu0 %v2698_v18 }
  0xfc   :  { %v1659_v44 = vpop.f32.mrb[0].mxu0 }
  0xfd   :  { %v1660_v46 = vpop.f32.mrb[1].mxu0 }
  0xfe   :  { %v1661_v47 = vadd.f32 %v1660_v46, %v1659_v44  ;;  %v1662_v48 = vpop.f32.mrb[2].mxu0  ;;  %v75_v46 = vunpack.c.h.bf16 %v2731_v28 }
  0xff   :  { %v1663_v49 = vpop.f32.mrb[3].mxu0 }
 0x100   :  { %v276_v50 = vadd.f32 %v1661_v47, %v1575_v45  ;;  %v1664_v51 = vadd.f32 %v1663_v49, %v1662_v48  ;;  %v74_v49 = vunpack.c.l.bf16 %v2731_v28 }
 0x102   :  { %v2810_v52 = vmax.f32 %v276_v50, 0.0  ;;  %v279_v53 = vadd.f32 %v1664_v51, %v1575_v45 }
 0x104   :  { %v2812_v54 = vmax.f32 %v279_v53, 0.0  ;;  %v1665_v55 = vpop.f32.mrb[4].mxu0  ;;  %1893 = vmatprep.mubr.f32.mxu1 %v2810_v52  ;;  %v381_v56 = vmul.f32 %v2810_v52, %v2810_v52 }
 0x105   :  { %v1666_v57 = vpop.f32.mrb[5].mxu0 }
 0x106   :  { %v382_v58 = vmul.f32 %v2812_v54, %v2812_v54  ;;  %v1667_v59 = vadd.f32 %v1666_v57, %v1665_v55  ;;  %v1668_v60 = vpop.f32.mrb[6].mxu0  ;;  %1894 = vmatmul.mubr.f32.vlgmr.msra.gmra.mrb[0].mxu1 %v2812_v54  ;;  %1931 = vmatprep.mubr.f32.mxu0 %v381_v56  ;;  %v1593_v55 = vld [vmem:[%s3174_s5] ss:$0 sm:$0xff] }
 0x107   :  { %v1669_v61 = vpop.f32.mrb[7].mxu0  ;;  %1938 = vmatpush3.bf16.msra.mxu1 %v2501_v5 }
 0x108   :  { %v284_v62 = vadd.f32 %v1667_v59, %v1575_v45  ;;  %v1670_v63 = vadd.f32 %v1669_v61, %v1668_v60  ;;  %1932 = vmatmul.mubr.f32.vlgmr.msra.gmra.mrb[8].mxu0 %v382_v58  ;;  %1939 = vmatprep.subr.bf16.mxu1 %v2502_v6 }
 0x109   :  { %2292 = vmatpush3.bf16.msra.mxu0 %v2698_v18 }
 0x10a   :  { %v2821_v0 = vmax.f32 %v284_v62, 0.0  ;;  %v287_v1 = vadd.f32 %v1670_v63, %v1575_v45  ;;  %2294 = vmatprep.subr.bf16.mxu0 %v2700_v19  ;;  %v77_v62 = vunpack.c.h.bf16 %v2761_v36  ;;  %v76_v63 = vunpack.c.l.bf16 %v2761_v36  ;;  %v2915_v36 = vld [vmem:[%s3175_s8] ss:$0 sm:$0xff] }
 0x10b   :  { %1940 = vmatpush3.bf16.msra.mxu1 %v2502_v6 }
 0x10c   :  { %v2824_v2 = vmax.f32 %v287_v1, 0.0  ;;  %1896 = vmatprep.mubr.f32.mxu1 %v2821_v0  ;;  %v383_v3 = vmul.f32 %v2821_v0, %v2821_v0  ;;  %1941 = vmatprep.subr.bf16.mxu1 %v2503_v7 }
 0x10d   :  { %2296 = vmatpush3.bf16.msra.mxu0 %v2700_v19 }
 0x10e   :  { %1897 = vmatmul.mubr.f32.gmra.mrb[2].mxu1 %v2824_v2  ;;  %1934 = vmatprep.mubr.f32.mxu0 %v383_v3  ;;  %v384_v4 = vmul.f32 %v2824_v2, %v2824_v2 }
 0x10f   :  { %2298 = vmatprep.subr.bf16.mxu0 %v2717_v24  ;;  %1942 = vmatpush3.bf16.msra.mxu1 %v2503_v7 }
 0x110   :  { %1935 = vmatmul.mubr.f32.gmra.mrb[10].mxu0 %v384_v4  ;;  %1943 = vmatprep.subr.bf16.mxu1 %v2504_v8 }
 0x111   :  { %2300 = vmatpush3.bf16.msra.mxu0 %v2717_v24 }
 0x112   :  { %2302 = vmatprep.subr.bf16.mxu0 %v2735_v29 }
 0x113   :  { %1944 = vmatpush3.bf16.msra.mxu1 %v2504_v8 }
 0x114   :  { %1945 = vmatprep.subr.bf16.mxu1 %v2505_v9 }
 0x115   :  { %2304 = vmatpush3.bf16.msra.mxu0 %v2735_v29 }
 0x116   :  { %2306 = vmatprep.subr.bf16.mxu0 %v2749_v33 }
 0x117   :  { %1946 = vmatpush3.bf16.msra.mxu1 %v2505_v9 }
 0x118   :  { %1947 = vmatprep.subr.bf16.mxu1 %v2506_v10 }
 0x119   :  { %2308 = vmatpush3.bf16.msra.mxu0 %v2749_v33 }
 0x11a   :  { %2310 = vmatprep.subr.bf16.mxu0 %v2767_v37 }
 0x11b   :  { %1948 = vmatpush3.bf16.msra.mxu1 %v2506_v10 }
 0x11c   :  { %1949 = vmatprep.subr.bf16.mxu1 %v2507_v11 }
 0x11d   :  { %2312 = vmatpush3.bf16.msra.mxu0 %v2767_v37 }
 0x11e   :  { %2314 = vmatprep.subr.bf16.mxu0 %v2788_v40 }
 0x11f   :  { %1950 = vmatpush3.bf16.msra.mxu1 %v2507_v11 }
 0x120   :  { %1951 = vmatprep.subr.bf16.mxu1 %v2508_v12 }
 0x121   :  { %2316 = vmatpush3.bf16.msra.mxu0 %v2788_v40 }
 0x122   :  { %2318 = vmatprep.subr.bf16.mxu0 %v2800_v43 }
 0x123   :  { %1952 = vmatpush3.bf16.msra.mxu1 %v2508_v12 }
 0x124   :  { %2322 = vmatprep.subr.bf16.mxu1 %v2698_v18 }
 0x125   :  { %2320 = vmatpush3.bf16.msra.mxu0 %v2800_v43 }
 0x1d9   :  { %v1895_v13 = vpop.f32.mrb[0].mxu1 }
 0x1da   :  { %v471_v14 = vmul.f32 %v1895_v13, %v1895_v13  ;;  %v362_v15 = vpop.f32.mrb[1].mxu1  ;;  %v487_v47 = vsub.f32 %v2812_v54, %v1895_v13 }
 0x1db   :  { %v470_v16 = vmul.f32 %v362_v15, %v362_v15  ;;  %v1933_v17 = vpop.f32.mrb[8].mxu0  ;;  %v486_v50 = vsub.f32 %v2810_v52, %v362_v15 }
 0x1dc   :  { %v475_v20 = vsub.f32 %v1933_v17, %v471_v14  ;;  %v451_v21 = vpop.f32.mrb[9].mxu0 }
 0x1dd   :  { %v474_v22 = vsub.f32 %v451_v21, %v470_v16 }
 0x1de   :  { %v479_v23 = vadd.f32 1e-05, %v475_v20 }
 0x1df   :  { %v478_v25 = vadd.f32 1e-05, %v474_v22 }
 0x1e0   :  { %2527 = vrsqrt.f32 %v479_v23 }
 0x1e1   :  { %2529 = vrsqrt.f32 %v478_v25  ;;  %v1898_v26 = vpop.f32.mrb[2].mxu1 }
 0x1e2   :  { %v473_v27 = vmul.f32 %v1898_v26, %v1898_v26  ;;  %v372_v30 = vpop.f32.mrb[3].mxu1  ;;  %v489_v28 = vsub.f32 %v2824_v2, %v1898_v26 }
 0x1e3   :  { %v472_v31 = vmul.f32 %v372_v30, %v372_v30  ;;  %v1936_v32 = vpop.f32.mrb[10].mxu0  ;;  %v488_v1 = vsub.f32 %v2821_v0, %v372_v30 }
 0x1e4   :  { %v477_v34 = vsub.f32 %v1936_v32, %v473_v27  ;;  %v461_v35 = vpop.f32.mrb[11].mxu0  ;;  %v2510_v32 = vld [vmem:[%s3176_s7 + $0x8] sm:$0xff]  }
 0x1e5   :  { %v476_v38 = vsub.f32 %v461_v35, %v472_v31  ;;  %v2509_v31 = vld [vmem:[%s3176_s7] sm:$0xff]   ;;  %v2512_v35 = vld [vmem:[%s3176_s7 + $0x18] sm:$0xff]  }
 0x1e6   :  { %v481_v39 = vadd.f32 1e-05, %v477_v34  ;;  %2033 = vmatprep.subr.bf16.mxu0 %v2509_v31  ;;  %v2511_v34 = vld [vmem:[%s3176_s7 + $0x10] sm:$0xff]  }
 0x1e7   :  { %v480_v41 = vadd.f32 1e-05, %v476_v38  ;;  %v2513_v38 = vld [vmem:[%s3176_s7 + $0x20] sm:$0xff]  }
 0x1e8   :  { %2531 = vrsqrt.f32 %v481_v39  ;;  %v2514_v39 = vld [vmem:[%s3176_s7 + $0x28] sm:$0xff]  }
 0x1e9   :  { %2533 = vrsqrt.f32 %v480_v41  ;;  %v2515_v41 = vld [vmem:[%s3176_s7 + $0x30] sm:$0xff]  }
 0x1ea   :  { %v2528_v44 = vpop.eup %2527 }
 0x1eb   :  { %v2530_v45 = vpop.eup %2529  ;;  %v497_v48 = vmul.f32 %v2528_v44, %v1592_v42 }
 0x1ec   :  { %v496_v51 = vmul.f32 %v2530_v45, %v1592_v42 }
 0x1ed   :  { %v501_v53 = vmul.f32 %v497_v48, %v487_v47 }
 0x1ee   :  { %v500_v56 = vmul.f32 %v496_v51, %v486_v50 }
 0x1ef   :  { %v505_v57 = vadd.f32 %v501_v53, %v75_v46 }
 0x1f0   :  { %v504_v58 = vadd.f32 %v500_v56, %v74_v49 }
 0x1f1   :  { %v2880_v59 = vadd.f32 %v1593_v55, %v505_v57 }
 0x1f2   :  { %v2532_v60 = vpop.eup %2531  ;;  %v2882_v61 = vadd.f32 %v1593_v55, %v504_v58 }
 0x1f3   :  { %v2534_v54 = vpop.eup %2533  ;;  %v499_v52 = vmul.f32 %v2532_v60, %v1592_v42 }
 0x1f4   :  { %v498_v3 = vmul.f32 %v2534_v54, %v1592_v42  ;;  %v518_v4 = vpack.c.bf16 %v2880_v59, %v2882_v61  ;;  %v2516_v42 = vld [vmem:[%s3176_s7 + $0x38] sm:$0xff]  }
 0x1f5   :  { %v503_v5 = vmul.f32 %v499_v52, %v489_v28 }
 0x1f6   :  { %v502_v6 = vmul.f32 %v498_v3, %v488_v1  ;;  %1953 = vmatprep.mubr.bf16.mxu1 %v518_v4  ;;  %v2984_v3 = vld [vmem:[%s3177_s9] ss:$0 sm:$0xff] }
 0x1f7   :  { %v507_v7 = vadd.f32 %v503_v5, %v77_v62 }
 0x1f8   :  { %v506_v8 = vadd.f32 %v502_v6, %v76_v63 }
 0x1f9   :  { %v2890_v9 = vadd.f32 %v1593_v55, %v507_v7 }
 0x1fa   :  { %v2892_v10 = vadd.f32 %v1593_v55, %v506_v8 }
 0x1fc   :  { %v519_v2 = vpack.c.bf16 %v2890_v9, %v2892_v10 }
 0x1fe   :  { %1954 = vmatmul.mubr.bf16.vlgmr.msra.gmra.mrb[4].mxu1 %v519_v2 }
 0x1ff   :  { %2324 = vmatpush3.bf16.msra.mxu1 %v2698_v18 }
 0x200   :  { %2326 = vmatprep.subr.bf16.mxu1 %v2700_v19 }
 0x203   :  { %2328 = vmatpush3.bf16.msra.mxu1 %v2700_v19 }
 0x204   :  { %2330 = vmatprep.subr.bf16.mxu1 %v2717_v24 }
 0x207   :  { %2332 = vmatpush3.bf16.msra.mxu1 %v2717_v24 }
 0x208   :  { %2334 = vmatprep.subr.bf16.mxu1 %v2735_v29 }
 0x20b   :  { %2336 = vmatpush3.bf16.msra.mxu1 %v2735_v29 }
 0x20c   :  { %2338 = vmatprep.subr.bf16.mxu1 %v2749_v33 }
 0x20f   :  { %2340 = vmatpush3.bf16.msra.mxu1 %v2749_v33 }
 0x210   :  { %2342 = vmatprep.subr.bf16.mxu1 %v2767_v37 }
 0x213   :  { %2344 = vmatpush3.bf16.msra.mxu1 %v2767_v37 }
 0x214   :  { %2346 = vmatprep.subr.bf16.mxu1 %v2788_v40 }
 0x217   :  { %2348 = vmatpush3.bf16.msra.mxu1 %v2788_v40 }
 0x218   :  { %2350 = vmatprep.subr.bf16.mxu1 %v2800_v43 }
 0x21b   :  { %2352 = vmatpush3.bf16.msra.mxu1 %v2800_v43 }
 0x21c   :  { %2354 = vmatprep.subr.bf16.mxu1 %v2698_v18 }
 0x2d1   :  { %v1955_v0 = vpop.f32.mrb[4].mxu1 }
 0x2d2   :  { %v634_v11 = vadd.f32 %v1955_v0, %v2915_v36  ;;  %v625_v12 = vpop.f32.mrb[5].mxu1 }
 0x2d3   :  { %v626_v13 = vadd.f32 %v2915_v36, %v625_v12  ;;  %v1956_v14 = vpop.f32.mrb[6].mxu1  ;;  %v2993_v12 = vld [vmem:[%s3178_s10] ss:$0 sm:$0xff] }
 0x2d4   :  { %v628_v15 = vpop.f32.mrb[7].mxu1  ;;  %v637_v17 = vadd.f32 %v1956_v14, %v2915_v36  ;;  %v2923_v21 = vmax.f32 %v634_v11, 0.0 }
 0x2d5   :  { %v2919_v16 = vmax.f32 %v626_v13, 0.0  ;;  %v629_v20 = vadd.f32 %v2915_v36, %v628_v15 }
 0x2d6   :  { %v2930_v25 = vmax.f32 %v637_v17, 0.0  ;;  %v733_v27 = vmul.f32 %v2923_v21, %v2923_v21 }
 0x2d7   :  { %v2925_v22 = vmax.f32 %v629_v20, 0.0  ;;  %1989 = vmatprep.mubr.f32.mxu0 %v2919_v16  ;;  %v731_v23 = vmul.f32 %v2919_v16, %v2919_v16 }
 0x2d8   :  { %v734_v30 = vmul.f32 %v2930_v25, %v2930_v25 }
 0x2d9   :  { %v732_v26 = vmul.f32 %v2925_v22, %v2925_v22  ;;  %1990 = vmatmul.mubr.f32.vlgmr.msra.gmra.mrb[12].mxu0 %v2925_v22  ;;  %2027 = vmatprep.mubr.f32.mxu1 %v731_v23 }
 0x2da   :  { %1992 = vmatprep.mubr.f32.mxu0 %v2923_v21  ;;  %2034 = vmatpush3.bf16.msra.mxu0 %v2509_v31 }
 0x2db   :  { %2028 = vmatmul.mubr.f32.vlgmr.msra.gmra.mrb[8].mxu1 %v732_v26  ;;  %2035 = vmatprep.subr.bf16.mxu0 %v2510_v32 }
 0x2dc   :  { %2030 = vmatprep.mubr.f32.mxu1 %v733_v27  ;;  %2356 = vmatpush3.bf16.msra.mxu1 %v2698_v18 }
 0x2dd   :  { %1993 = vmatmul.mubr.f32.gmra.mrb[14].mxu0 %v2930_v25  ;;  %2358 = vmatprep.subr.bf16.mxu1 %v2700_v19 }
 0x2de   :  { %2036 = vmatpush3.bf16.msra.mxu0 %v2510_v32 }
 0x2df   :  { %2031 = vmatmul.mubr.f32.gmra.mrb[10].mxu1 %v734_v30  ;;  %2037 = vmatprep.subr.bf16.mxu0 %v2511_v34 }
 0x2e0   :  { %2360 = vmatpush3.bf16.msra.mxu1 %v2700_v19 }
 0x2e1   :  { %2362 = vmatprep.subr.bf16.mxu1 %v2717_v24 }
 0x2e2   :  { %2038 = vmatpush3.bf16.msra.mxu0 %v2511_v34 }
 0x2e3   :  { %2039 = vmatprep.subr.bf16.mxu0 %v2512_v35 }
 0x2e4   :  { %2364 = vmatpush3.bf16.msra.mxu1 %v2717_v24 }
 0x2e5   :  { %2366 = vmatprep.subr.bf16.mxu1 %v2735_v29 }
 0x2e6   :  { %2040 = vmatpush3.bf16.msra.mxu0 %v2512_v35 }
 0x2e7   :  { %2041 = vmatprep.subr.bf16.mxu0 %v2513_v38 }
 0x2e8   :  { %2368 = vmatpush3.bf16.msra.mxu1 %v2735_v29 }
 0x2e9   :  { %2370 = vmatprep.subr.bf16.mxu1 %v2749_v33 }
 0x2ea   :  { %2042 = vmatpush3.bf16.msra.mxu0 %v2513_v38 }
 0x2eb   :  { %2043 = vmatprep.subr.bf16.mxu0 %v2514_v39 }
 0x2ec   :  { %2372 = vmatpush3.bf16.msra.mxu1 %v2749_v33 }
 0x2ed   :  { %2374 = vmatprep.subr.bf16.mxu1 %v2767_v37 }
 0x2ee   :  { %2044 = vmatpush3.bf16.msra.mxu0 %v2514_v39 }
 0x2ef   :  { %2045 = vmatprep.subr.bf16.mxu0 %v2515_v41 }
 0x2f0   :  { %2376 = vmatpush3.bf16.msra.mxu1 %v2767_v37 }
 0x2f1   :  { %2378 = vmatprep.subr.bf16.mxu1 %v2788_v40 }
 0x2f2   :  { %2046 = vmatpush3.bf16.msra.mxu0 %v2515_v41 }
 0x2f3   :  { %2047 = vmatprep.subr.bf16.mxu0 %v2516_v42 }
 0x2f4   :  { %2380 = vmatpush3.bf16.msra.mxu1 %v2788_v40 }
 0x2f5   :  { %2382 = vmatprep.subr.bf16.mxu1 %v2800_v43 }
 0x2f6   :  { %2048 = vmatpush3.bf16.msra.mxu0 %v2516_v42 }
 0x2f7   :  { %2386 = vmatprep.subr.bf16.mxu0 %v2698_v18 }
 0x2f8   :  { %2384 = vmatpush3.bf16.msra.mxu1 %v2800_v43 }
 0x3ac   :  { %v1991_v44 = vpop.f32.mrb[12].mxu0 }
 0x3ad   :  { %v821_v45 = vmul.f32 %v1991_v44, %v1991_v44  ;;  %v712_v46 = vpop.f32.mrb[13].mxu0  ;;  %v837_v6 = vsub.f32 %v2925_v22, %v1991_v44 }
 0x3ae   :  { %v820_v47 = vmul.f32 %v712_v46, %v712_v46  ;;  %v2029_v48 = vpop.f32.mrb[8].mxu1  ;;  %v836_v8 = vsub.f32 %v2919_v16, %v712_v46 }
 0x3af   :  { %v825_v49 = vsub.f32 %v2029_v48, %v821_v45  ;;  %v801_v50 = vpop.f32.mrb[9].mxu1 }
 0x3b0   :  { %v824_v51 = vsub.f32 %v801_v50, %v820_v47  ;;  %v1994_v53 = vpop.f32.mrb[14].mxu0 }
 0x3b1   :  { %v829_v55 = vadd.f32 1e-05, %v825_v49  ;;  %v823_v56 = vmul.f32 %v1994_v53, %v1994_v53  ;;  %v722_v57 = vpop.f32.mrb[15].mxu0  ;;  %v839_v15 = vsub.f32 %v2930_v25, %v1994_v53  ;;  %v2517_v53 = vld [vmem:[%s3179_s11] sm:$0xff]  }
 0x3b2   :  { %v828_v58 = vadd.f32 1e-05, %v824_v51  ;;  %v822_v60 = vmul.f32 %v722_v57, %v722_v57  ;;  %v2032_v54 = vpop.f32.mrb[10].mxu1  ;;  %v838_v22 = vsub.f32 %v2923_v21, %v722_v57  ;;  %2129 = vmatprep.subr.bf16.mxu1 %v2517_v53  ;;  %v2520_v57 = vld [vmem:[%s3179_s11 + $0x18] sm:$0xff]  }
 0x3b3   :  { %2535 = vrsqrt.f32 %v829_v55  ;;  %v827_v62 = vsub.f32 %v2032_v54, %v823_v56  ;;  %v811_v28 = vpop.f32.mrb[11].mxu1  ;;  %v2518_v55 = vld [vmem:[%s3179_s11 + $0x8] sm:$0xff]   ;;  %v2519_v56 = vld [vmem:[%s3179_s11 + $0x10] sm:$0xff]  }
 0x3b4   :  { %2537 = vrsqrt.f32 %v828_v58  ;;  %v826_v52 = vsub.f32 %v811_v28, %v822_v60  ;;  %v2521_v58 = vld [vmem:[%s3179_s11 + $0x20] sm:$0xff]   ;;  %v2522_v60 = vld [vmem:[%s3179_s11 + $0x28] sm:$0xff]   ;;  %v2523_v54 = vld [vmem:[%s3179_s11 + $0x30] sm:$0xff]  }
 0x3b5   :  { %v831_v63 = vadd.f32 1e-05, %v827_v62  ;;  %v2524_v62 = vld [vmem:[%s3179_s11 + $0x38] sm:$0xff]  }
 0x3b6   :  { %v830_v1 = vadd.f32 1e-05, %v826_v52 }
 0x3b7   :  { %2539 = vrsqrt.f32 %v831_v63 }
 0x3b8   :  { %2541 = vrsqrt.f32 %v830_v1 }
 0x3bd   :  { %v2536_v4 = vpop.eup %2535 }
 0x3be   :  { %v2538_v5 = vpop.eup %2537  ;;  %v847_v7 = vmul.f32 %v2536_v4, %v2984_v3 }
 0x3bf   :  { %v846_v2 = vmul.f32 %v2538_v5, %v2984_v3 }
 0x3c0   :  { %v851_v0 = vmul.f32 %v847_v7, %v837_v6 }
 0x3c1   :  { %v2540_v11 = vpop.eup %2539  ;;  %v850_v13 = vmul.f32 %v846_v2, %v836_v8 }
 0x3c2   :  { %v2542_v14 = vpop.eup %2541  ;;  %v849_v17 = vmul.f32 %v2540_v11, %v2984_v3  ;;  %v855_v20 = vadd.f32 %v851_v0, %v2880_v59 }
 0x3c3   :  { %v848_v16 = vmul.f32 %v2542_v14, %v2984_v3  ;;  %v854_v23 = vadd.f32 %v850_v13, %v2882_v61 }
 0x3c4   :  { %v853_v26 = vmul.f32 %v849_v17, %v839_v15  ;;  %v3002_v27 = vadd.f32 %v2993_v12, %v855_v20 }
 0x3c5   :  { %v852_v30 = vmul.f32 %v848_v16, %v838_v22  ;;  %v3005_v31 = vadd.f32 %v2993_v12, %v854_v23 }
 0x3c6   :  { %v857_v25 = vadd.f32 %v853_v26, %v2890_v9 }
 0x3c7   :  { %v868_v32 = vpack.c.bf16 %v3002_v27, %v3005_v31  ;;  %v856_v59 = vadd.f32 %v852_v30, %v2892_v10 }
 0x3c8   :  { %v3012_v21 = vadd.f32 %v2993_v12, %v857_v25 }
 0x3c9   :  { %2049 = vmatprep.mubr.bf16.mxu0 %v868_v32  ;;  %v3015_v61 = vadd.f32 %v2993_v12, %v856_v59 }
 0x3cb   :  { %v869_v34 = vpack.c.bf16 %v3012_v21, %v3015_v61 }
 0x3cd   :  { %2050 = vmatmul.mubr.bf16.vlgmr.msra.gmra.mrb[16].mxu0 %v869_v34 }
 0x3ce   :  { %2388 = vmatpush3.bf16.msra.mxu0 %v2698_v18 }
 0x3cf   :  { %2390 = vmatprep.subr.bf16.mxu0 %v2700_v19 }
 0x3d2   :  { %2392 = vmatpush3.bf16.msra.mxu0 %v2700_v19 }
 0x3d3   :  { %2394 = vmatprep.subr.bf16.mxu0 %v2717_v24 }
 0x3d6   :  { %2396 = vmatpush3.bf16.msra.mxu0 %v2717_v24 }
 0x3d7   :  { %2398 = vmatprep.subr.bf16.mxu0 %v2735_v29 }
 0x3da   :  { %2400 = vmatpush3.bf16.msra.mxu0 %v2735_v29 }
 0x3db   :  { %2402 = vmatprep.subr.bf16.mxu0 %v2749_v33 }
 0x3de   :  { %2404 = vmatpush3.bf16.msra.mxu0 %v2749_v33 }
 0x3df   :  { %2406 = vmatprep.subr.bf16.mxu0 %v2767_v37 }
 0x3e2   :  { %2408 = vmatpush3.bf16.msra.mxu0 %v2767_v37 }
 0x3e3   :  { %2410 = vmatprep.subr.bf16.mxu0 %v2788_v40 }
 0x3e6   :  { %2412 = vmatpush3.bf16.msra.mxu0 %v2788_v40 }
 0x3e7   :  { %2414 = vmatprep.subr.bf16.mxu0 %v2800_v43 }
 0x3ea   :  { %2416 = vmatpush3.bf16.msra.mxu0 %v2800_v43 }
 0x3eb   :  { %2418 = vmatprep.subr.bf16.mxu0 %v2698_v18 }
 0x4a0   :  { %v2051_v9 = vpop.f32.mrb[16].mxu0 }
 0x4a1   :  { %v977_v10 = vadd.f32 %v2051_v9, %v2915_v36  ;;  %v968_v35 = vpop.f32.mrb[17].mxu0 }
 0x4a2   :  { %v969_v38 = vadd.f32 %v2915_v36, %v968_v35  ;;  %v2052_v39 = vpop.f32.mrb[18].mxu0 }
 0x4a3   :  { %v971_v41 = vpop.f32.mrb[19].mxu0  ;;  %v980_v44 = vadd.f32 %v2052_v39, %v2915_v36  ;;  %v3041_v46 = vmax.f32 %v977_v10, 0.0 }
 0x4a4   :  { %v3037_v42 = vmax.f32 %v969_v38, 0.0  ;;  %v972_v45 = vadd.f32 %v2915_v36, %v971_v41 }
 0x4a5   :  { %v3048_v49 = vmax.f32 %v980_v44, 0.0  ;;  %v1074_v36 = vmul.f32 %v3041_v46, %v3041_v46 }
 0x4a6   :  { %v3043_v47 = vmax.f32 %v972_v45, 0.0  ;;  %2085 = vmatprep.mubr.f32.mxu1 %v3037_v42  ;;  %v1072_v48 = vmul.f32 %v3037_v42, %v3037_v42 }
 0x4a7   :  { %v1075_v51 = vmul.f32 %v3048_v49, %v3048_v49 }
 0x4a8   :  { %v1073_v50 = vmul.f32 %v3043_v47, %v3043_v47  ;;  %2086 = vmatmul.mubr.f32.vlgmr.msra.gmra.mrb[12].mxu1 %v3043_v47  ;;  %2123 = vmatprep.mubr.f32.mxu0 %v1072_v48 }
 0x4a9   :  { %2088 = vmatprep.mubr.f32.mxu1 %v3041_v46  ;;  %2130 = vmatpush3.bf16.msra.mxu1 %v2517_v53 }
 0x4aa   :  { %2124 = vmatmul.mubr.f32.vlgmr.msra.gmra.mrb[20].mxu0 %v1073_v50  ;;  %2131 = vmatprep.subr.bf16.mxu1 %v2518_v55 }
 0x4ab   :  { %2126 = vmatprep.mubr.f32.mxu0 %v1074_v36  ;;  %2420 = vmatpush3.bf16.msra.mxu0 %v2698_v18 }
 0x4ac   :  { %2089 = vmatmul.mubr.f32.gmra.mrb[14].mxu1 %v3048_v49  ;;  %2422 = vmatprep.subr.bf16.mxu0 %v2700_v19 }
 0x4ad   :  { %2132 = vmatpush3.bf16.msra.mxu1 %v2518_v55 }
 0x4ae   :  { %2127 = vmatmul.mubr.f32.gmra.mrb[22].mxu0 %v1075_v51  ;;  %2133 = vmatprep.subr.bf16.mxu1 %v2519_v56 }
 0x4af   :  { %2424 = vmatpush3.bf16.msra.mxu0 %v2700_v19 }
 0x4b0   :  { %2426 = vmatprep.subr.bf16.mxu0 %v2717_v24 }
 0x4b1   :  { %2134 = vmatpush3.bf16.msra.mxu1 %v2519_v56 }
 0x4b2   :  { %2135 = vmatprep.subr.bf16.mxu1 %v2520_v57 }
 0x4b3   :  { %2428 = vmatpush3.bf16.msra.mxu0 %v2717_v24 }
 0x4b4   :  { %2430 = vmatprep.subr.bf16.mxu0 %v2735_v29 }
 0x4b5   :  { %2136 = vmatpush3.bf16.msra.mxu1 %v2520_v57 }
 0x4b6   :  { %2137 = vmatprep.subr.bf16.mxu1 %v2521_v58 }
 0x4b7   :  { %2432 = vmatpush3.bf16.msra.mxu0 %v2735_v29 }
 0x4b8   :  { %2434 = vmatprep.subr.bf16.mxu0 %v2749_v33 }
 0x4b9   :  { %2138 = vmatpush3.bf16.msra.mxu1 %v2521_v58 }
 0x4ba   :  { %2139 = vmatprep.subr.bf16.mxu1 %v2522_v60 }
 0x4bb   :  { %2436 = vmatpush3.bf16.msra.mxu0 %v2749_v33 }
 0x4bc   :  { %2438 = vmatprep.subr.bf16.mxu0 %v2767_v37 }
 0x4bd   :  { %2140 = vmatpush3.bf16.msra.mxu1 %v2522_v60 }
 0x4be   :  { %2141 = vmatprep.subr.bf16.mxu1 %v2523_v54 }
 0x4bf   :  { %2440 = vmatpush3.bf16.msra.mxu0 %v2767_v37 }
 0x4c0   :  { %2442 = vmatprep.subr.bf16.mxu0 %v2788_v40 }
 0x4c1   :  { %2142 = vmatpush3.bf16.msra.mxu1 %v2523_v54 }
 0x4c2   :  { %2143 = vmatprep.subr.bf16.mxu1 %v2524_v62 }
 0x4c3   :  { %2444 = vmatpush3.bf16.msra.mxu0 %v2788_v40 }
 0x4c4   :  { %2446 = vmatprep.subr.bf16.mxu0 %v2800_v43 }
 0x4c5   :  { %2144 = vmatpush3.bf16.msra.mxu1 %v2524_v62 }
 0x4c6   :  { %2450 = vmatprep.subr.bf16.mxu1 %v2698_v18 }
 0x4c7   :  { %2448 = vmatpush3.bf16.msra.mxu0 %v2800_v43 }
 0x57b   :  { %v2087_v28 = vpop.f32.mrb[12].mxu1 }
 0x57c   :  { %v1162_v52 = vmul.f32 %v2087_v28, %v2087_v28  ;;  %v1053_v63 = vpop.f32.mrb[13].mxu1  ;;  %v1178_v25 = vsub.f32 %v3043_v47, %v2087_v28 }
 0x57d   :  { %v1161_v1 = vmul.f32 %v1053_v63, %v1053_v63  ;;  %v2125_v4 = vpop.f32.mrb[20].mxu0  ;;  %v1177_v59 = vsub.f32 %v3037_v42, %v1053_v63 }
 0x57e   :  { %v1166_v5 = vsub.f32 %v2125_v4, %v1162_v52  ;;  %v1142_v6 = vpop.f32.mrb[21].mxu0 }
 0x57f   :  { %v1165_v7 = vsub.f32 %v1142_v6, %v1161_v1  ;;  %v2090_v8 = vpop.f32.mrb[14].mxu1 }
 0x580   :  { %v1170_v2 = vadd.f32 1e-05, %v1166_v5  ;;  %v1164_v0 = vmul.f32 %v2090_v8, %v2090_v8  ;;  %v1063_v11 = vpop.f32.mrb[15].mxu1  ;;  %v1180_v39 = vsub.f32 %v3048_v49, %v2090_v8 }
 0x581   :  { %v1169_v13 = vadd.f32 1e-05, %v1165_v7  ;;  %v1163_v14 = vmul.f32 %v1063_v11, %v1063_v11  ;;  %v2128_v15 = vpop.f32.mrb[22].mxu0  ;;  %v1179_v45 = vsub.f32 %v3041_v46, %v1063_v11 }
 0x582   :  { %2543 = vrsqrt.f32 %v1170_v2  ;;  %v1168_v17 = vsub.f32 %v2128_v15, %v1164_v0  ;;  %v1152_v20 = vpop.f32.mrb[23].mxu0 }
 0x583   :  { %2545 = vrsqrt.f32 %v1169_v13  ;;  %v1167_v22 = vsub.f32 %v1152_v20, %v1163_v14 }
 0x584   :  { %v1172_v16 = vadd.f32 1e-05, %v1168_v17 }
 0x585   :  { %v1171_v23 = vadd.f32 1e-05, %v1167_v22 }
 0x586   :  { %2547 = vrsqrt.f32 %v1172_v16 }
 0x587   :  { %2549 = vrsqrt.f32 %v1171_v23  ;;  %v1622_v23 = vld [vmem:[%s3181_s13] ss:$0 sm:$0xff] }
 0x58c   :  { %v2544_v26 = vpop.eup %2543 }
 0x58d   :  { %v2546_v30 = vpop.eup %2545  ;;  %v1182_v32 = vmul.f32 %v2544_v26, %v2984_v3 }
 0x58e   :  { %v1181_v34 = vmul.f32 %v2546_v30, %v2984_v3 }
 0x58f   :  { %v1186_v9 = vmul.f32 %v1182_v32, %v1178_v25 }
 0x590   :  { %v2548_v10 = vpop.eup %2547  ;;  %v1185_v35 = vmul.f32 %v1181_v34, %v1177_v59 }
 0x591   :  { %v2550_v38 = vpop.eup %2549  ;;  %v1184_v41 = vmul.f32 %v2548_v10, %v2984_v3  ;;  %v1190_v44 = vadd.f32 %v1186_v9, %v3002_v27 }
 0x592   :  { %v1183_v47 = vmul.f32 %v2550_v38, %v2984_v3  ;;  %v1189_v48 = vadd.f32 %v1185_v35, %v3005_v31  ;;  %v1623_v35 = vld [vmem:[%s3182_s14] ss:$0 sm:$0xff] }
 0x593   :  { %v1188_v50 = vmul.f32 %v1184_v41, %v1180_v39  ;;  %v3110_v42 = vadd.f32 %v2993_v12, %v1190_v44 }
 0x594   :  { %v1187_v36 = vmul.f32 %v1183_v47, %v1179_v45  ;;  %v3113_v51 = vadd.f32 %v2993_v12, %v1189_v48 }
 0x595   :  { %v1192_v49 = vadd.f32 %v1188_v50, %v3012_v21 }
 0x596   :  { %v1197_v53 = vpack.c.bf16 %v3110_v42, %v3113_v51  ;;  %v1191_v27 = vadd.f32 %v1187_v36, %v3015_v61 }
 0x597   :  { %v3120_v46 = vadd.f32 %v2993_v12, %v1192_v49 }
 0x598   :  { %2145 = vmatprep.mubr.bf16.mxu1 %v1197_v53  ;;  %v3123_v3 = vadd.f32 %v2993_v12, %v1191_v27 }
 0x59a   :  { %v1198_v31 = vpack.c.bf16 %v3120_v46, %v3123_v3 }
 0x59c   :  { %2146 = vmatmul.mubr.bf16.vlgmr.msra.gmra.mrb[16].mxu1 %v1198_v31 }
 0x59d   :  { %2452 = vmatpush3.bf16.msra.mxu1 %v2698_v18  ;;  %v1613_v18 = vld [vmem:[%s3180_s12] ss:$0 sm:$0xff] }
 0x59e   :  { %2454 = vmatprep.subr.bf16.mxu1 %v2700_v19 }
 0x5a1   :  { %2456 = vmatpush3.bf16.msra.mxu1 %v2700_v19 }
 0x5a2   :  { %2458 = vmatprep.subr.bf16.mxu1 %v2717_v24 }
 0x5a5   :  { %2460 = vmatpush3.bf16.msra.mxu1 %v2717_v24 }
 0x5a6   :  { %2462 = vmatprep.subr.bf16.mxu1 %v2735_v29 }
 0x5a9   :  { %2464 = vmatpush3.bf16.msra.mxu1 %v2735_v29 }
 0x5aa   :  { %2466 = vmatprep.subr.bf16.mxu1 %v2749_v33 }
 0x5ad   :  { %2468 = vmatpush3.bf16.msra.mxu1 %v2749_v33 }
 0x5ae   :  { %2470 = vmatprep.subr.bf16.mxu1 %v2767_v37 }
 0x5b1   :  { %2472 = vmatpush3.bf16.msra.mxu1 %v2767_v37 }
 0x5b2   :  { %2474 = vmatprep.subr.bf16.mxu1 %v2788_v40 }
 0x5b5   :  { %2476 = vmatpush3.bf16.msra.mxu1 %v2788_v40 }
 0x5b6   :  { %2478 = vmatprep.subr.bf16.mxu1 %v2800_v43 }
 0x5b9   :  { %2480 = vmatpush3.bf16.msra.mxu1 %v2800_v43 }
 0x66f   :  { %v2147_v19 = vpop.f32.mrb[16].mxu1 }
 0x670   :  { %v1313_v24 = vadd.f32 %v2147_v19, %v1613_v18  ;;  %v1304_v29 = vpop.f32.mrb[17].mxu1 }
 0x671   :  { %v1305_v33 = vadd.f32 %v1613_v18, %v1304_v29  ;;  %v2148_v12 = vpop.f32.mrb[18].mxu1 }
 0x672   :  { %v1307_v21 = vpop.f32.mrb[19].mxu1  ;;  %v1316_v37 = vadd.f32 %v2148_v12, %v1613_v18  ;;  %v3145_v56 = vmax.f32 %v1313_v24, 0.0 }
 0x673   :  { %v1321_v61 = vmax.f32 %v1305_v33, 0.0  ;;  %v1308_v55 = vadd.f32 %v1613_v18, %v1307_v21 }
 0x674   :  { %v1324_v58 = vmax.f32 %v1316_v37, 0.0  ;;  %v1412_v60 = vmul.f32 %v3145_v56, %v3145_v56 }
 0x675   :  { %v1322_v40 = vmax.f32 %v1308_v55, 0.0  ;;  %2181 = vmatprep.mubr.f32.mxu0 %v1321_v61  ;;  %v1410_v57 = vmul.f32 %v1321_v61, %v1321_v61 }
 0x676   :  { %v1413_v54 = vmul.f32 %v1324_v58, %v1324_v58 }
 0x677   :  { %v1411_v43 = vmul.f32 %v1322_v40, %v1322_v40  ;;  %2182 = vmatmul.mubr.f32.vlgmr.msra.gmra.mrb[24].mxu0 %v1322_v40  ;;  %2219 = vmatprep.mubr.f32.mxu1 %v1410_v57 }
 0x678   :  { %2184 = vmatprep.mubr.f32.mxu0 %v3145_v56 }
 0x679   :  { %2220 = vmatmul.mubr.f32.vlgmr.msra.gmra.mrb[20].mxu1 %v1411_v43 }
 0x67a   :  { %2222 = vmatprep.mubr.f32.mxu1 %v1412_v60 }
 0x67b   :  { %2185 = vmatmul.mubr.f32.gmra.mrb[26].mxu0 %v1324_v58 }
 0x67d   :  { %2223 = vmatmul.mubr.f32.gmra.mrb[22].mxu1 %v1413_v54 }
 0x74a   :  { %v2183_v62 = vpop.f32.mrb[24].mxu0 }
 0x74b   :  { %v1500_v28 = vmul.f32 %v2183_v62, %v2183_v62  ;;  %v1391_v52 = vpop.f32.mrb[25].mxu0  ;;  %v1516_v25 = vsub.f32 %v1322_v40, %v2183_v62 }
 0x74c   :  { %v1499_v63 = vmul.f32 %v1391_v52, %v1391_v52  ;;  %v2221_v1 = vpop.f32.mrb[20].mxu1  ;;  %v1515_v59 = vsub.f32 %v1321_v61, %v1391_v52 }
 0x74d   :  { %v1504_v4 = vsub.f32 %v2221_v1, %v1500_v28  ;;  %v1480_v5 = vpop.f32.mrb[21].mxu1 }
 0x74e   :  { %v1503_v6 = vsub.f32 %v1480_v5, %v1499_v63  ;;  %v2186_v7 = vpop.f32.mrb[26].mxu0 }
 0x74f   :  { %v1508_v8 = vadd.f32 1e-05, %v1504_v4  ;;  %v1502_v2 = vmul.f32 %v2186_v7, %v2186_v7  ;;  %v1401_v0 = vpop.f32.mrb[27].mxu0  ;;  %v1518_v44 = vsub.f32 %v1324_v58, %v2186_v7 }
 0x750   :  { %v1507_v11 = vadd.f32 1e-05, %v1503_v6  ;;  %v1501_v13 = vmul.f32 %v1401_v0, %v1401_v0  ;;  %v2224_v14 = vpop.f32.mrb[22].mxu1  ;;  %v1517_v48 = vsub.f32 %v3145_v56, %v1401_v0 }
 0x751   :  { %2551 = vrsqrt.f32 %v1508_v8  ;;  %v1506_v15 = vsub.f32 %v2224_v14, %v1502_v2  ;;  %v1490_v17 = vpop.f32.mrb[23].mxu1 }
 0x752   :  { %2553 = vrsqrt.f32 %v1507_v11  ;;  %v1505_v20 = vsub.f32 %v1490_v17, %v1501_v13 }
 0x753   :  { %v1510_v22 = vadd.f32 1e-05, %v1506_v15 }
 0x754   :  { %v1509_v16 = vadd.f32 1e-05, %v1505_v20 }
 0x755   :  { %2555 = vrsqrt.f32 %v1510_v22 }
 0x756   :  { %2557 = vrsqrt.f32 %v1509_v16 }
 0x75b   :  { %v2552_v26 = vpop.eup %2551 }
 0x75c   :  { %v2554_v30 = vpop.eup %2553  ;;  %v1526_v32 = vmul.f32 %v2552_v26, %v1622_v23 }
 0x75d   :  { %v1525_v34 = vmul.f32 %v2554_v30, %v1622_v23 }
 0x75e   :  { %v1530_v9 = vmul.f32 %v1526_v32, %v1516_v25 }
 0x75f   :  { %v2556_v10 = vpop.eup %2555  ;;  %v1529_v38 = vmul.f32 %v1525_v34, %v1515_v59 }
 0x760   :  { %v2558_v39 = vpop.eup %2557  ;;  %v1534_v41 = vadd.f32 %v1530_v9, %v3110_v42  ;;  %v1528_v45 = vmul.f32 %v2556_v10, %v1622_v23 }
 0x761   :  { %v1533_v47 = vadd.f32 %v1529_v38, %v3113_v51  ;;  %v1527_v50 = vmul.f32 %v2558_v39, %v1622_v23 }
 0x762   :  { %v1544_v36 = vadd.f32 %v1623_v35, %v1534_v41  ;;  %v1532_v49 = vmul.f32 %v1528_v45, %v1518_v44 }
 0x763   :  { %v1543_v53 = vadd.f32 %v1623_v35, %v1533_v47  ;;  %v1531_v27 = vmul.f32 %v1527_v50, %v1517_v48 }
 0x764   :  { %v1536_v31 = vadd.f32 %v1532_v49, %v3120_v46 }
 0x765   :  { %v1635_v18 = vpack.c.bf16 %v1544_v36, %v1543_v53  ;;  %v1535_v19 = vadd.f32 %v1531_v27, %v3123_v3 }
 0x766   :  { %v1546_v24 = vadd.f32 %v1623_v35, %v1536_v31 }
 0x767   :  { %1636 = vst [vmem:[%s3183_s16] sm:$0xff] %v1635_v18   ;;  %v1545_v42 = vadd.f32 %v1623_v35, %v1535_v19 }
 0x769   :  { %v1640_v29 = vpack.c.bf16 %v1546_v24, %v1545_v42 }
 0x76b   :  { %1642 = vst [vmem:[%s3183_s16 + $0x8] sm:$0xff] %v1640_v29  }

</bundles_post_ra>
